<compile_context>
chip_gen: v6e
topology: v6e:2x2x1
jax: 0.10.0
libtpu: 0.0.40
codegen_flags: <defaults>
</compile_context>

<pallas_src>
import math

import jax
import jax.numpy as jnp
from jax.experimental import pallas as pl
from jax.experimental.pallas import tpu as pltpu

_EPS = 1e-5
_LANE = 128


def _round_up(n, m):
    return ((n + m - 1) // m) * m


def _pick_tn(cop):
    """Output-channel tile: full padded channel width when reasonable (ResNet
    widths <=512), else the largest 128-multiple divisor."""
    if cop <= 512:
        return cop
    for cand in (512, 384, 256, 128):
        if cop % cand == 0:
            return cand
    return _LANE


def _cparams(n_axes):
    return pltpu.CompilerParams(
        dimension_semantics=("parallel",) * n_axes,
        vmem_limit_bytes=48 * 1024 * 1024)


def _cost(flops, bytes_accessed):
    return pl.CostEstimate(flops=int(flops), transcendentals=0,
                           bytes_accessed=int(bytes_accessed))


# ----------------------------- Pallas kernels ------------------------------

def _make_conv3x3_stats_kernel(*, stride, ho, wo, n_phase):
    """conv3x3 of one image / one output-channel tile via 9 in-kernel
    shifted-window matmuls (bf16 in, f32 MXU accumulate); emits z (bf16) and
    per-(image, tile) BN partial sums taken from the f32 accumulator."""
    m = ho * wo

    def kernel(*refs):
        x_refs = refs[:n_phase]
        w_ref = refs[n_phase]
        z_ref, ps_ref, pq_ref = refs[n_phase + 1:n_phase + 4]
        cin = w_ref.shape[1]
        tn = w_ref.shape[2]
        acc = jnp.zeros((m, tn), jnp.float32)
        for t in range(9):
            dy, dx = divmod(t, 3)
            if stride == 1:
                xt = x_refs[0][0, dy:dy + ho, dx:dx + wo, :]
            else:  # stride 2: tap -> polyphase component + contiguous offset
                ph = (dy % 2) * 2 + (dx % 2)
                oy, ox = dy // 2, dx // 2
                xt = x_refs[ph][0, oy:oy + ho, ox:ox + wo, :]
            acc = acc + jnp.dot(xt.reshape(m, cin), w_ref[t],
                                preferred_element_type=jnp.float32)
        ps_ref[0] = jnp.sum(acc, axis=0, keepdims=True)
        pq_ref[0] = jnp.sum(acc * acc, axis=0, keepdims=True)
        z_ref[0] = acc.reshape(ho, wo, tn).astype(z_ref.dtype)

    return kernel


def _make_conv2_fused_kernel(*, ho, wo, with_shortcut):
    """conv2 = conv3x3(relu(z1*sc1 + sh1)) with BN1 folded into the input path
    (out1 never hits HBM), optional fused 1x1 projection shortcut, plus BN2 /
    BN_shortcut partial statistics."""
    m = ho * wo

    def kernel(*refs):
        if with_shortcut:
            (z1_ref, sc1_ref, sh1_ref, w2_ref, xs_ref, ws_ref,
             z2_ref, zs_ref, ps2_ref, pq2_ref, pss_ref, pqs_ref) = refs
        else:
            (z1_ref, sc1_ref, sh1_ref, w2_ref,
             z2_ref, ps2_ref, pq2_ref) = refs
        c1 = w2_ref.shape[1]
        tn = w2_ref.shape[2]

        # BN1 affine + ReLU in f32 VPU math, then build a zero-padded copy so
        # every tap below is a contiguous static slice.
        z1 = z1_ref[0].reshape(m, c1).astype(jnp.float32)
        a1 = jnp.maximum(z1 * sc1_ref[...] + sh1_ref[...], 0.0).reshape(ho, wo, c1)
        zc = jnp.zeros((ho, 1, c1), jnp.float32)
        zr = jnp.zeros((1, wo + 2, c1), jnp.float32)
        a1p = jnp.concatenate([zc, a1, zc], axis=1)
        a1p = jnp.concatenate([zr, a1p, zr], axis=0).astype(jnp.bfloat16)

        acc = jnp.zeros((m, tn), jnp.float32)
        for t in range(9):
            dy, dx = divmod(t, 3)
            xt = a1p[dy:dy + ho, dx:dx + wo, :]
            acc = acc + jnp.dot(xt.reshape(m, c1), w2_ref[t],
                                preferred_element_type=jnp.float32)
        ps2_ref[0] = jnp.sum(acc, axis=0, keepdims=True)
        pq2_ref[0] = jnp.sum(acc * acc, axis=0, keepdims=True)
        z2_ref[0] = acc.reshape(ho, wo, tn).astype(z2_ref.dtype)

        if with_shortcut:
            cs = ws_ref.shape[0]
            accs = jnp.dot(xs_ref[0].reshape(m, cs), ws_ref[...],
                           preferred_element_type=jnp.float32)
            pss_ref[0] = jnp.sum(accs, axis=0, keepdims=True)
            pqs_ref[0] = jnp.sum(accs * accs, axis=0, keepdims=True)
            zs_ref[0] = accs.reshape(ho, wo, tn).astype(zs_ref.dtype)

    return kernel


def _make_bn_add_relu_kernel(*, ho, wo, with_proj):
    """Final elementwise pass: BN2 affine (+ BN_s affine of zs, or identity
    residual) + ReLU, f32 VPU math, bf16 store."""
    m = ho * wo

    def kernel(*refs):
        if with_proj:
            z2_ref, zs_ref, sc2_ref, sh2_ref, scs_ref, shs_ref, o_ref = refs
        else:
            z2_ref, xres_ref, sc2_ref, sh2_ref, o_ref = refs
        c = o_ref.shape[-1]
        y = z2_ref[0].reshape(m, c).astype(jnp.float32) * sc2_ref[...] + sh2_ref[...]
        if with_proj:
            zs = zs_ref[0].reshape(m, c).astype(jnp.float32)
            y = y + zs * scs_ref[...] + shs_ref[...]
        else:
            res = xres_ref[0, 1:ho + 1, 1:wo + 1, :].reshape(m, c)
            y = y + res.astype(jnp.float32)
        o_ref[0] = jnp.maximum(y, 0.0).reshape(ho, wo, c).astype(o_ref.dtype)

    return kernel


# --------------------------- pallas_call wrappers ---------------------------

def conv3x3_bn_stats(x_phases, w9, ho, wo, stride, tn, cost):
    B = x_phases[0].shape[0]
    cin, cop = w9.shape[1], w9.shape[2]
    n_n = cop // tn
    kern = _make_conv3x3_stats_kernel(stride=stride, ho=ho, wo=wo,
                                      n_phase=len(x_phases))
    # grid = (channel-tile, batch); batch innermost so the weight block stays
    # resident across images; batch axis (>=2) gives megacore its parallelism.
    img_specs = [pl.BlockSpec((1,) + xph.shape[1:], lambda j, b: (b, 0, 0, 0))
                 for xph in x_phases]
    return pl.pallas_call(
        kern,
        grid=(n_n, B),
        in_specs=img_specs + [pl.BlockSpec((9, cin, tn), lambda j, b: (0, 0, j))],
        out_specs=(
            pl.BlockSpec((1, ho, wo, tn), lambda j, b: (b, 0, 0, j)),
            pl.BlockSpec((1, 1, tn), lambda j, b: (b, 0, j)),
            pl.BlockSpec((1, 1, tn), lambda j, b: (b, 0, j)),
        ),
        out_shape=(
            jax.ShapeDtypeStruct((B, ho, wo, cop), jnp.bfloat16),
            jax.ShapeDtypeStruct((B, 1, cop), jnp.float32),
            jax.ShapeDtypeStruct((B, 1, cop), jnp.float32),
        ),
        compiler_params=_cparams(2),
        cost_estimate=cost,
    )(*x_phases, w9)


def conv2_fused(z1, sc1, sh1, w9, ho, wo, tn, cost, xs=None, ws=None):
    B = z1.shape[0]
    c1, cop = w9.shape[1], w9.shape[2]
    n_n = cop // tn
    with_shortcut = xs is not None
    kern = _make_conv2_fused_kernel(ho=ho, wo=wo, with_shortcut=with_shortcut)
    row_spec = pl.BlockSpec((1, c1), lambda j, b: (0, 0))
    in_specs = [
        pl.BlockSpec((1, ho, wo, c1), lambda j, b: (b, 0, 0, 0)),
        row_spec, row_spec,
        pl.BlockSpec((9, c1, tn), lambda j, b: (0, 0, j)),
    ]
    z_spec = pl.BlockSpec((1, ho, wo, tn), lambda j, b: (b, 0, 0, j))
    stat_spec = pl.BlockSpec((1, 1, tn), lambda j, b: (b, 0, j))
    z_shape = jax.ShapeDtypeStruct((B, ho, wo, cop), jnp.bfloat16)
    stat_shape = jax.ShapeDtypeStruct((B, 1, cop), jnp.float32)
    if with_shortcut:
        cs = ws.shape[0]
        in_specs += [pl.BlockSpec((1, ho, wo, cs), lambda j, b: (b, 0, 0, 0)),
                     pl.BlockSpec((cs, tn), lambda j, b: (0, j))]
        out_specs = (z_spec, z_spec, stat_spec, stat_spec, stat_spec, stat_spec)
        out_shape = (z_shape, z_shape, stat_shape, stat_shape, stat_shape, stat_shape)
        args = (z1, sc1, sh1, w9, xs, ws)
    else:
        out_specs = (z_spec, stat_spec, stat_spec)
        out_shape = (z_shape, stat_shape, stat_shape)
        args = (z1, sc1, sh1, w9)
    return pl.pallas_call(
        kern, grid=(n_n, B),
        in_specs=in_specs, out_specs=out_specs, out_shape=out_shape,
        compiler_params=_cparams(2), cost_estimate=cost,
    )(*args)


def bn_add_relu(z2, sc2, sh2, ho, wo, *, zs=None, scs=None, shs=None, xres=None):
    B, cop = z2.shape[0], z2.shape[-1]
    with_proj = zs is not None
    kern = _make_bn_add_relu_kernel(ho=ho, wo=wo, with_proj=with_proj)
    img_spec = pl.BlockSpec((1, ho, wo, cop), lambda b: (b, 0, 0, 0))
    row_spec = pl.BlockSpec((1, cop), lambda b: (0, 0))
    if with_proj:
        in_specs = [img_spec, img_spec, row_spec, row_spec, row_spec, row_spec]
        args = (z2, zs, sc2, sh2, scs, shs)
    else:
        hp, wp = xres.shape[1], xres.shape[2]
        in_specs = [img_spec,
                    pl.BlockSpec((1, hp, wp, cop), lambda b: (b, 0, 0, 0)),
                    row_spec, row_spec]
        args = (z2, xres, sc2, sh2)
    return pl.pallas_call(
        kern, grid=(B,), in_specs=in_specs,
        out_specs=img_spec,
        out_shape=jax.ShapeDtypeStruct((B, ho, wo, cop), jnp.bfloat16),
        compiler_params=_cparams(1),
    )(*args)


# ----------------------------- glue (plain JAX) -----------------------------

def _prep_w3x3(w, cin_p, cout_p):
    """torch OIHW 3x3 weight -> [tap=kh*3+kw, Cin_p, Cout_p] bf16."""
    co, ci = w.shape[0], w.shape[1]
    wt = jnp.transpose(w, (2, 3, 1, 0)).reshape(9, ci, co)
    return jnp.pad(wt, ((0, 0), (0, cin_p - ci), (0, cout_p - co))).astype(jnp.bfloat16)


def _finalize_stats(psum, psq, m_true):
    s = jnp.sum(psum, axis=(0, 1))
    q = jnp.sum(psq, axis=(0, 1))
    # TODO(synk): single-pass E[x^2]-E[x]^2 in f32 can lose precision for very
    # large batch*spatial; switch to summed per-tile centered moments if hit.
    mean = s / m_true
    var = jnp.maximum(q / m_true - mean * mean, 0.0)
    return mean, var


def _fold_bn(gamma, beta, mean, var, cop):
    g = jnp.pad(gamma, (0, cop - gamma.shape[0]))     # padded channels -> 0
    b = jnp.pad(beta, (0, cop - beta.shape[0]))
    scale = g * jax.lax.rsqrt(var + _EPS)
    shift = b - mean * scale
    return (scale.reshape(1, cop).astype(jnp.float32),
            shift.reshape(1, cop).astype(jnp.float32))


def resblk_forward(x_nchw, p, stride):
    """Pallas ResBlk.forward (training-mode BatchNorm), NCHW f32 in/out.

    # TODO(synk): in a full network keep activations NHWC/bf16 between blocks
    # to drop the entry/exit NCHW<->NHWC transposes and the final f32 cast.
    """
    bf16 = jnp.bfloat16
    x = jnp.transpose(x_nchw, (0, 2, 3, 1)).astype(jnp.float32)      # NHWC
    B, H, W, ci = x.shape
    co = p["w1"].shape[0]
    cip = _round_up(ci, _LANE)
    cop = _round_up(co, _LANE)
    tn = _pick_tn(cop)
    n_n = cop // tn

    assert stride in (1, 2), "ResBlk uses stride 1 or 2"
    ho = (H + 2 - 3) // stride + 1
    wo = (W + 2 - 3) // stride + 1
    m_true = B * ho * wo

    # Spatially (pad=1) + channel padded bf16 input image.
    xp = jnp.pad(x.astype(bf16), ((0, 0), (1, 1), (1, 1), (0, cip - ci)))
    if stride == 1:
        x_phases = [xp]
    else:
        assert H % 2 == 0 and W % 2 == 0, "stride-2 path assumes even H, W"
        # Polyphase split (same total bytes): every tap becomes a contiguous
        # in-kernel slice of one component.
        x_phases = [xp[:, py::2, qx::2, :] for py in (0, 1) for qx in (0, 1)]

    # ------------------------------ conv1 ----------------------------------
    w1 = _prep_w3x3(p["w1"], cip, cop)
    img_bytes = sum(math.prod(ph.shape) for ph in x_phases) * 2
    cost1 = _cost(2 * m_true * 9 * cip * cop,
                  n_n * img_bytes + n_n * 9 * cip * cop * 2
                  + m_true * cop * 2 + 2 * B * cop * 4)
    z1, ps1, pq1 = conv3x3_bn_stats(x_phases, w1, ho, wo, stride, tn, cost1)
    sc1, sh1 = _fold_bn(p["g1"], p["be1"], *_finalize_stats(ps1, pq1, m_true), cop)

    # ----------- conv2 (BN1+ReLU fused in) (+ fused 1x1 shortcut) ----------
    w2 = _prep_w3x3(p["w2"], cop, cop)
    base_flops = 2 * m_true * 9 * cop * cop
    base_bytes = (n_n * m_true * cop * 2 + n_n * 9 * cop * cop * 2
                  + m_true * cop * 2 + 4 * B * cop * 4)

    if ci != co:
        xs = jnp.pad(x[:, ::stride, ::stride, :].astype(bf16),
                     ((0, 0), (0, 0), (0, 0), (0, cip - ci)))
        ws = jnp.pad(p["ws"].reshape(co, ci).T,
                     ((0, cip - ci), (0, cop - co))).astype(bf16)
        cost2 = _cost(base_flops + 2 * m_true * cip * cop,
                      base_bytes + n_n * (m_true * cip * 2 + cip * cop * 2)
                      + m_true * cop * 2)
        z2, zs, ps2, pq2, pss, pqs = conv2_fused(z1, sc1, sh1, w2, ho, wo, tn,
                                                 cost2, xs=xs, ws=ws)
        sc2, sh2 = _fold_bn(p["g2"], p["be2"], *_finalize_stats(ps2, pq2, m_true), cop)
        scs, shs = _fold_bn(p["gs"], p["bes"], *_finalize_stats(pss, pqs, m_true), cop)
        out = bn_add_relu(z2, sc2, sh2, ho, wo, zs=zs, scs=scs, shs=shs)
    else:
        # identity shortcut: shapes only line up for stride == 1 (as in torch)
        assert stride == 1, "identity shortcut requires stride == 1"
        cost2 = _cost(base_flops, base_bytes)
        z2, ps2, pq2 = conv2_fused(z1, sc1, sh1, w2, ho, wo, tn, cost2)
        sc2, sh2 = _fold_bn(p["g2"], p["be2"], *_finalize_stats(ps2, pq2, m_true), cop)
        # Residual read back in bf16 from the already-padded input image
        # (interior sliced in-kernel -> no extra XLA slice pass).
        out = bn_add_relu(z2, sc2, sh2, ho, wo, xres=xp)

    out = out[..., :co].astype(jnp.float32)
    return jnp.transpose(out, (0, 3, 1, 2))            # back to NCHW f32


# ----------------------------- reference (JAX) ------------------------------

def ref_resblk_forward(x, p, stride):
    def conv(x, w, b, s, pad):
        y = jax.lax.conv_general_dilated(
            x, w, (s, s), [(pad, pad), (pad, pad)],
            dimension_numbers=("NCHW", "OIHW", "NCHW"),
            precision=jax.lax.Precision.HIGHEST)
        return y + b[None, :, None, None]

    def bn(x, g, be):
        mu = jnp.mean(x, axis=(0, 2, 3), keepdims=True)
        var = jnp.mean((x - mu) ** 2, axis=(0, 2, 3), keepdims=True)
        return (g[None, :, None, None] * (x - mu) * jax.lax.rsqrt(var + _EPS)
                + be[None, :, None, None])

    out = jax.nn.relu(bn(conv(x, p["w1"], p["b1"], stride, 1), p["g1"], p["be1"]))
    out = bn(conv(out, p["w2"], p["b2"], 1, 1), p["g2"], p["be2"])
    if p["w1"].shape[1] != p["w1"].shape[0]:
        sc = bn(conv(x, p["ws"], p["bs"], stride, 0), p["gs"], p["bes"])
    else:
        sc = x
    return jax.nn.relu(sc + out)


# --------------------------------- main --------------------------------------

def make_params(key, ch_in, ch_out):
    ks = jax.random.split(key, 12)
    f32 = jnp.float32
    return {
        "w1": 0.2 * jax.random.normal(ks[0], (ch_out, ch_in, 3, 3), f32),
        "b1": 0.1 * jax.random.normal(ks[1], (ch_out,), f32),
        "g1": 1.0 + 0.1 * jax.random.normal(ks[2], (ch_out,), f32),
        "be1": 0.1 * jax.random.normal(ks[3], (ch_out,), f32),
        "w2": 0.2 * jax.random.normal(ks[4], (ch_out, ch_out, 3, 3), f32),
        "b2": 0.1 * jax.random.normal(ks[5], (ch_out,), f32),
        "g2": 1.0 + 0.1 * jax.random.normal(ks[6], (ch_out,), f32),
        "be2": 0.1 * jax.random.normal(ks[7], (ch_out,), f32),
        "ws": 0.2 * jax.random.normal(ks[8], (ch_out, ch_in, 1, 1), f32),
        "bs": 0.1 * jax.random.normal(ks[9], (ch_out,), f32),
        "gs": 1.0 + 0.1 * jax.random.normal(ks[10], (ch_out,), f32),
        "bes": 0.1 * jax.random.normal(ks[11], (ch_out,), f32),
    }


if __name__ == "__main__":
    key = jax.random.PRNGKey(0)
    k_x, k_p, k_x2, k_p2 = jax.random.split(key, 4)

    # 1) projection-shortcut block: ch_in=4 -> ch_out=8, stride 2
    B, ci, co, H, W, s = 2, 4, 8, 16, 16, 2
    x = jax.random.normal(k_x, (B, ci, H, W), jnp.float32)
    params = make_params(k_p, ci, co)
    out = jax.block_until_ready(resblk_forward(x, params, s))
    ref = jax.block_until_ready(ref_resblk_forward(x, params, s))
    assert out.shape == ref.shape == (B, co, H // s, W // s)
    assert jnp.all(jnp.isfinite(out))
    assert jnp.allclose(out, ref, atol=5e-2, rtol=5e-2), \
        f"projection path max abs diff {jnp.max(jnp.abs(out - ref))}"

    # 2) identity-shortcut block: ch_in == ch_out == 8, stride 1
    x2 = jax.random.normal(k_x2, (B, co, 8, 8), jnp.float32)
    params2 = make_params(k_p2, co, co)
    out2 = jax.block_until_ready(resblk_forward(x2, params2, 1))
    ref2 = jax.block_until_ready(ref_resblk_forward(x2, params2, 1))
    assert out2.shape == ref2.shape == (B, co, 8, 8)
    assert jnp.all(jnp.isfinite(out2))
    assert jnp.allclose(out2, ref2, atol=5e-2, rtol=5e-2), \
        f"identity path max abs diff {jnp.max(jnp.abs(out2 - ref2))}"

    print("KERNEL_OK")
</pallas_src>

<mosaic_0001>
module attributes {stable_mosaic.version = 11 : i64} {
  func.func @kernel(%arg0: i32, %arg1: i32, %arg2: memref<1x9x9x128xbf16, #tpu.memory_space<vmem>>, %arg3: memref<1x9x9x128xbf16, #tpu.memory_space<vmem>>, %arg4: memref<1x9x9x128xbf16, #tpu.memory_space<vmem>>, %arg5: memref<1x9x9x128xbf16, #tpu.memory_space<vmem>>, %arg6: memref<9x128x128xbf16, #tpu.memory_space<vmem>>, %arg7: memref<1x8x8x128xbf16, #tpu.memory_space<vmem>>, %arg8: memref<1x1x128xf32, #tpu.memory_space<vmem>>, %arg9: memref<1x1x128xf32, #tpu.memory_space<vmem>>) attributes {dimension_semantics = [#tpu.dimension_semantics<parallel>, #tpu.dimension_semantics<parallel>], iteration_bounds = array<i64: 1, 2>, scalar_prefetch = 0 : i64, scratch_operands = 0 : i64, tpu.core_type = #tpu.core_type<tc>, window_params = [{transform_indices = @transform_0, window_bounds = array<i64: 1, 9, 9, 128>}, {transform_indices = @transform_1, window_bounds = array<i64: 1, 9, 9, 128>}, {transform_indices = @transform_2, window_bounds = array<i64: 1, 9, 9, 128>}, {transform_indices = @transform_3, window_bounds = array<i64: 1, 9, 9, 128>}, {transform_indices = @transform_4, window_bounds = array<i64: 9, 128, 128>}, {transform_indices = @transform_5, window_bounds = array<i64: 1, 8, 8, 128>}, {transform_indices = @transform_6, window_bounds = array<i64: 1, 1, 128>}, {transform_indices = @transform_7, window_bounds = array<i64: 1, 1, 128>}]} {
    %cst = arith.constant 0.000000e+00 : f32
    %0 = vector.broadcast %cst : f32 to vector<64x128xf32>
    %c0 = arith.constant 0 : index
    %c0_0 = arith.constant 0 : index
    %c0_1 = arith.constant 0 : index
    %c0_2 = arith.constant 0 : index
    %1 = vector.load %arg2[%c0, %c0_0, %c0_1, %c0_2] : memref<1x9x9x128xbf16, #tpu.memory_space<vmem>>, vector<1x8x8x128xbf16>
    %2 = vector.shape_cast %1 : vector<1x8x8x128xbf16> to vector<8x8x128xbf16>
    %3 = vector.shape_cast %2 : vector<8x8x128xbf16> to vector<64x128xbf16>
    %c0_3 = arith.constant 0 : index
    %c0_4 = arith.constant 0 : index
    %c0_5 = arith.constant 0 : index
    %4 = vector.load %arg6[%c0_3, %c0_4, %c0_5] : memref<9x128x128xbf16, #tpu.memory_space<vmem>>, vector<1x128x128xbf16>
    %5 = vector.shape_cast %4 : vector<1x128x128xbf16> to vector<128x128xbf16>
    %cst_6 = arith.constant dense<0.000000e+00> : vector<64x128xf32>
    %6 = tpu.matmul %3, %5, %cst_6 {dimension_numbers = #tpu.dot_dimension_numbers<[1], [0], [0], [1], [0, 0, 1, 1], [], []>} : vector<64x128xbf16>, vector<128x128xbf16>, vector<64x128xf32> -> vector<64x128xf32>
    %7 = arith.addf %0, %6 : vector<64x128xf32>
    %c0_7 = arith.constant 0 : index
    %c0_8 = arith.constant 0 : index
    %c0_9 = arith.constant 0 : index
    %c0_10 = arith.constant 0 : index
    %8 = vector.load %arg3[%c0_7, %c0_8, %c0_9, %c0_10] : memref<1x9x9x128xbf16, #tpu.memory_space<vmem>>, vector<1x8x8x128xbf16>
    %9 = vector.shape_cast %8 : vector<1x8x8x128xbf16> to vector<8x8x128xbf16>
    %10 = vector.shape_cast %9 : vector<8x8x128xbf16> to vector<64x128xbf16>
    %c1 = arith.constant 1 : index
    %c0_11 = arith.constant 0 : index
    %c0_12 = arith.constant 0 : index
    %11 = vector.load %arg6[%c1, %c0_11, %c0_12] : memref<9x128x128xbf16, #tpu.memory_space<vmem>>, vector<1x128x128xbf16>
    %12 = vector.shape_cast %11 : vector<1x128x128xbf16> to vector<128x128xbf16>
    %cst_13 = arith.constant dense<0.000000e+00> : vector<64x128xf32>
    %13 = tpu.matmul %10, %12, %cst_13 {dimension_numbers = #tpu.dot_dimension_numbers<[1], [0], [0], [1], [0, 0, 1, 1], [], []>} : vector<64x128xbf16>, vector<128x128xbf16>, vector<64x128xf32> -> vector<64x128xf32>
    %14 = arith.addf %7, %13 : vector<64x128xf32>
    %c0_14 = arith.constant 0 : index
    %c0_15 = arith.constant 0 : index
    %c1_16 = arith.constant 1 : index
    %c0_17 = arith.constant 0 : index
    %15 = vector.load %arg2[%c0_14, %c0_15, %c1_16, %c0_17] : memref<1x9x9x128xbf16, #tpu.memory_space<vmem>>, vector<1x8x8x128xbf16>
    %16 = vector.shape_cast %15 : vector<1x8x8x128xbf16> to vector<8x8x128xbf16>
    %17 = vector.shape_cast %16 : vector<8x8x128xbf16> to vector<64x128xbf16>
    %c2 = arith.constant 2 : index
    %c0_18 = arith.constant 0 : index
    %c0_19 = arith.constant 0 : index
    %18 = vector.load %arg6[%c2, %c0_18, %c0_19] : memref<9x128x128xbf16, #tpu.memory_space<vmem>>, vector<1x128x128xbf16>
    %19 = vector.shape_cast %18 : vector<1x128x128xbf16> to vector<128x128xbf16>
    %cst_20 = arith.constant dense<0.000000e+00> : vector<64x128xf32>
    %20 = tpu.matmul %17, %19, %cst_20 {dimension_numbers = #tpu.dot_dimension_numbers<[1], [0], [0], [1], [0, 0, 1, 1], [], []>} : vector<64x128xbf16>, vector<128x128xbf16>, vector<64x128xf32> -> vector<64x128xf32>
    %21 = arith.addf %14, %20 : vector<64x128xf32>
    %c0_21 = arith.constant 0 : index
    %c0_22 = arith.constant 0 : index
    %c0_23 = arith.constant 0 : index
    %c0_24 = arith.constant 0 : index
    %22 = vector.load %arg4[%c0_21, %c0_22, %c0_23, %c0_24] : memref<1x9x9x128xbf16, #tpu.memory_space<vmem>>, vector<1x8x8x128xbf16>
    %23 = vector.shape_cast %22 : vector<1x8x8x128xbf16> to vector<8x8x128xbf16>
    %24 = vector.shape_cast %23 : vector<8x8x128xbf16> to vector<64x128xbf16>
    %c3 = arith.constant 3 : index
    %c0_25 = arith.constant 0 : index
    %c0_26 = arith.constant 0 : index
    %25 = vector.load %arg6[%c3, %c0_25, %c0_26] : memref<9x128x128xbf16, #tpu.memory_space<vmem>>, vector<1x128x128xbf16>
    %26 = vector.shape_cast %25 : vector<1x128x128xbf16> to vector<128x128xbf16>
    %cst_27 = arith.constant dense<0.000000e+00> : vector<64x128xf32>
    %27 = tpu.matmul %24, %26, %cst_27 {dimension_numbers = #tpu.dot_dimension_numbers<[1], [0], [0], [1], [0, 0, 1, 1], [], []>} : vector<64x128xbf16>, vector<128x128xbf16>, vector<64x128xf32> -> vector<64x128xf32>
    %28 = arith.addf %21, %27 : vector<64x128xf32>
    %c0_28 = arith.constant 0 : index
    %c0_29 = arith.constant 0 : index
    %c0_30 = arith.constant 0 : index
    %c0_31 = arith.constant 0 : index
    %29 = vector.load %arg5[%c0_28, %c0_29, %c0_30, %c0_31] : memref<1x9x9x128xbf16, #tpu.memory_space<vmem>>, vector<1x8x8x128xbf16>
    %30 = vector.shape_cast %29 : vector<1x8x8x128xbf16> to vector<8x8x128xbf16>
    %31 = vector.shape_cast %30 : vector<8x8x128xbf16> to vector<64x128xbf16>
    %c4 = arith.constant 4 : index
    %c0_32 = arith.constant 0 : index
    %c0_33 = arith.constant 0 : index
    %32 = vector.load %arg6[%c4, %c0_32, %c0_33] : memref<9x128x128xbf16, #tpu.memory_space<vmem>>, vector<1x128x128xbf16>
    %33 = vector.shape_cast %32 : vector<1x128x128xbf16> to vector<128x128xbf16>
    %cst_34 = arith.constant dense<0.000000e+00> : vector<64x128xf32>
    %34 = tpu.matmul %31, %33, %cst_34 {dimension_numbers = #tpu.dot_dimension_numbers<[1], [0], [0], [1], [0, 0, 1, 1], [], []>} : vector<64x128xbf16>, vector<128x128xbf16>, vector<64x128xf32> -> vector<64x128xf32>
    %35 = arith.addf %28, %34 : vector<64x128xf32>
    %c0_35 = arith.constant 0 : index
    %c0_36 = arith.constant 0 : index
    %c1_37 = arith.constant 1 : index
    %c0_38 = arith.constant 0 : index
    %36 = vector.load %arg4[%c0_35, %c0_36, %c1_37, %c0_38] : memref<1x9x9x128xbf16, #tpu.memory_space<vmem>>, vector<1x8x8x128xbf16>
    %37 = vector.shape_cast %36 : vector<1x8x8x128xbf16> to vector<8x8x128xbf16>
    %38 = vector.shape_cast %37 : vector<8x8x128xbf16> to vector<64x128xbf16>
    %c5 = arith.constant 5 : index
    %c0_39 = arith.constant 0 : index
    %c0_40 = arith.constant 0 : index
    %39 = vector.load %arg6[%c5, %c0_39, %c0_40] : memref<9x128x128xbf16, #tpu.memory_space<vmem>>, vector<1x128x128xbf16>
    %40 = vector.shape_cast %39 : vector<1x128x128xbf16> to vector<128x128xbf16>
    %cst_41 = arith.constant dense<0.000000e+00> : vector<64x128xf32>
    %41 = tpu.matmul %38, %40, %cst_41 {dimension_numbers = #tpu.dot_dimension_numbers<[1], [0], [0], [1], [0, 0, 1, 1], [], []>} : vector<64x128xbf16>, vector<128x128xbf16>, vector<64x128xf32> -> vector<64x128xf32>
    %42 = arith.addf %35, %41 : vector<64x128xf32>
    %c0_42 = arith.constant 0 : index
    %c1_43 = arith.constant 1 : index
    %c0_44 = arith.constant 0 : index
    %c0_45 = arith.constant 0 : index
    %43 = vector.load %arg2[%c0_42, %c1_43, %c0_44, %c0_45] : memref<1x9x9x128xbf16, #tpu.memory_space<vmem>>, vector<1x8x8x128xbf16>
    %44 = vector.shape_cast %43 : vector<1x8x8x128xbf16> to vector<8x8x128xbf16>
    %45 = vector.shape_cast %44 : vector<8x8x128xbf16> to vector<64x128xbf16>
    %c6 = arith.constant 6 : index
    %c0_46 = arith.constant 0 : index
    %c0_47 = arith.constant 0 : index
    %46 = vector.load %arg6[%c6, %c0_46, %c0_47] : memref<9x128x128xbf16, #tpu.memory_space<vmem>>, vector<1x128x128xbf16>
    %47 = vector.shape_cast %46 : vector<1x128x128xbf16> to vector<128x128xbf16>
    %cst_48 = arith.constant dense<0.000000e+00> : vector<64x128xf32>
    %48 = tpu.matmul %45, %47, %cst_48 {dimension_numbers = #tpu.dot_dimension_numbers<[1], [0], [0], [1], [0, 0, 1, 1], [], []>} : vector<64x128xbf16>, vector<128x128xbf16>, vector<64x128xf32> -> vector<64x128xf32>
    %49 = arith.addf %42, %48 : vector<64x128xf32>
    %c0_49 = arith.constant 0 : index
    %c1_50 = arith.constant 1 : index
    %c0_51 = arith.constant 0 : index
    %c0_52 = arith.constant 0 : index
    %50 = vector.load %arg3[%c0_49, %c1_50, %c0_51, %c0_52] : memref<1x9x9x128xbf16, #tpu.memory_space<vmem>>, vector<1x8x8x128xbf16>
    %51 = vector.shape_cast %50 : vector<1x8x8x128xbf16> to vector<8x8x128xbf16>
    %52 = vector.shape_cast %51 : vector<8x8x128xbf16> to vector<64x128xbf16>
    %c7 = arith.constant 7 : index
    %c0_53 = arith.constant 0 : index
    %c0_54 = arith.constant 0 : index
    %53 = vector.load %arg6[%c7, %c0_53, %c0_54] : memref<9x128x128xbf16, #tpu.memory_space<vmem>>, vector<1x128x128xbf16>
    %54 = vector.shape_cast %53 : vector<1x128x128xbf16> to vector<128x128xbf16>
    %cst_55 = arith.constant dense<0.000000e+00> : vector<64x128xf32>
    %55 = tpu.matmul %52, %54, %cst_55 {dimension_numbers = #tpu.dot_dimension_numbers<[1], [0], [0], [1], [0, 0, 1, 1], [], []>} : vector<64x128xbf16>, vector<128x128xbf16>, vector<64x128xf32> -> vector<64x128xf32>
    %56 = arith.addf %49, %55 : vector<64x128xf32>
    %c0_56 = arith.constant 0 : index
    %c1_57 = arith.constant 1 : index
    %c1_58 = arith.constant 1 : index
    %c0_59 = arith.constant 0 : index
    %57 = vector.load %arg2[%c0_56, %c1_57, %c1_58, %c0_59] : memref<1x9x9x128xbf16, #tpu.memory_space<vmem>>, vector<1x8x8x128xbf16>
    %58 = vector.shape_cast %57 : vector<1x8x8x128xbf16> to vector<8x8x128xbf16>
    %59 = vector.shape_cast %58 : vector<8x8x128xbf16> to vector<64x128xbf16>
    %c8 = arith.constant 8 : index
    %c0_60 = arith.constant 0 : index
    %c0_61 = arith.constant 0 : index
    %60 = vector.load %arg6[%c8, %c0_60, %c0_61] : memref<9x128x128xbf16, #tpu.memory_space<vmem>>, vector<1x128x128xbf16>
    %61 = vector.shape_cast %60 : vector<1x128x128xbf16> to vector<128x128xbf16>
    %cst_62 = arith.constant dense<0.000000e+00> : vector<64x128xf32>
    %62 = tpu.matmul %59, %61, %cst_62 {dimension_numbers = #tpu.dot_dimension_numbers<[1], [0], [0], [1], [0, 0, 1, 1], [], []>} : vector<64x128xbf16>, vector<128x128xbf16>, vector<64x128xf32> -> vector<64x128xf32>
    %63 = arith.addf %56, %62 : vector<64x128xf32>
    %cst_63 = arith.constant dense<0.000000e+00> : vector<128xf32>
    %64 = vector.multi_reduction <add>, %63, %cst_63 [0] : vector<64x128xf32> to vector<128xf32>
    %65 = vector.shape_cast %64 : vector<128xf32> to vector<1x128xf32>
    %c0_64 = arith.constant 0 : index
    %c0_65 = arith.constant 0 : index
    %c0_66 = arith.constant 0 : index
    %66 = vector.load %arg8[%c0_64, %c0_65, %c0_66] : memref<1x1x128xf32, #tpu.memory_space<vmem>>, vector<1x1x128xf32>
    %67 = vector.shape_cast %66 : vector<1x1x128xf32> to vector<1x128xf32>
    %68 = vector.shape_cast %65 : vector<1x128xf32> to vector<1x1x128xf32>
    tpu.vector_store %arg8[%c0_64, %c0_65, %c0_66], %68 {strides = array<i32>} : memref<1x1x128xf32, #tpu.memory_space<vmem>>, vector<1x1x128xf32>,
    %69 = arith.mulf %63, %63 : vector<64x128xf32>
    %cst_67 = arith.constant dense<0.000000e+00> : vector<128xf32>
    %70 = vector.multi_reduction <add>, %69, %cst_67 [0] : vector<64x128xf32> to vector<128xf32>
    %71 = vector.shape_cast %70 : vector<128xf32> to vector<1x128xf32>
    %c0_68 = arith.constant 0 : index
    %c0_69 = arith.constant 0 : index
    %c0_70 = arith.constant 0 : index
    %72 = vector.load %arg9[%c0_68, %c0_69, %c0_70] : memref<1x1x128xf32, #tpu.memory_space<vmem>>, vector<1x1x128xf32>
    %73 = vector.shape_cast %72 : vector<1x1x128xf32> to vector<1x128xf32>
    %74 = vector.shape_cast %71 : vector<1x128xf32> to vector<1x1x128xf32>
    tpu.vector_store %arg9[%c0_68, %c0_69, %c0_70], %74 {strides = array<i32>} : memref<1x1x128xf32, #tpu.memory_space<vmem>>, vector<1x1x128xf32>,
    %75 = vector.shape_cast %63 : vector<64x128xf32> to vector<8x8x128xf32>
    %76 = arith.truncf %75 : vector<8x8x128xf32> to vector<8x8x128xbf16>
    %c0_71 = arith.constant 0 : index
    %c0_72 = arith.constant 0 : index
    %c0_73 = arith.constant 0 : index
    %c0_74 = arith.constant 0 : index
    %77 = vector.load %arg7[%c0_71, %c0_72, %c0_73, %c0_74] : memref<1x8x8x128xbf16, #tpu.memory_space<vmem>>, vector<1x8x8x128xbf16>
    %78 = vector.shape_cast %77 : vector<1x8x8x128xbf16> to vector<8x8x128xbf16>
    %79 = vector.shape_cast %76 : vector<8x8x128xbf16> to vector<1x8x8x128xbf16>
    tpu.vector_store %arg7[%c0_71, %c0_72, %c0_73, %c0_74], %79 {strides = array<i32>} : memref<1x8x8x128xbf16, #tpu.memory_space<vmem>>, vector<1x8x8x128xbf16>,
    return
  }
  func.func @transform_0(%arg0: i32, %arg1: i32) -> (i32, i32, i32, i32) {
    %c0_i32 = arith.constant 0 : i32
    %c0_i32_0 = arith.constant 0 : i32
    %c0_i32_1 = arith.constant 0 : i32
    %c0_i32_2 = arith.constant 0 : i32
    return %arg1, %c0_i32, %c0_i32_0, %c0_i32_1 : i32, i32, i32, i32
  }
  func.func @transform_1(%arg0: i32, %arg1: i32) -> (i32, i32, i32, i32) {
    %c0_i32 = arith.constant 0 : i32
    %c0_i32_0 = arith.constant 0 : i32
    %c0_i32_1 = arith.constant 0 : i32
    %c0_i32_2 = arith.constant 0 : i32
    return %arg1, %c0_i32, %c0_i32_0, %c0_i32_1 : i32, i32, i32, i32
  }
  func.func @transform_2(%arg0: i32, %arg1: i32) -> (i32, i32, i32, i32) {
    %c0_i32 = arith.constant 0 : i32
    %c0_i32_0 = arith.constant 0 : i32
    %c0_i32_1 = arith.constant 0 : i32
    %c0_i32_2 = arith.constant 0 : i32
    return %arg1, %c0_i32, %c0_i32_0, %c0_i32_1 : i32, i32, i32, i32
  }
  func.func @transform_3(%arg0: i32, %arg1: i32) -> (i32, i32, i32, i32) {
    %c0_i32 = arith.constant 0 : i32
    %c0_i32_0 = arith.constant 0 : i32
    %c0_i32_1 = arith.constant 0 : i32
    %c0_i32_2 = arith.constant 0 : i32
    return %arg1, %c0_i32, %c0_i32_0, %c0_i32_1 : i32, i32, i32, i32
  }
  func.func @transform_4(%arg0: i32, %arg1: i32) -> (i32, i32, i32) {
    %c0_i32 = arith.constant 0 : i32
    %c0_i32_0 = arith.constant 0 : i32
    %c0_i32_1 = arith.constant 0 : i32
    return %c0_i32, %c0_i32_0, %arg0 : i32, i32, i32
  }
  func.func @transform_5(%arg0: i32, %arg1: i32) -> (i32, i32, i32, i32) {
    %c0_i32 = arith.constant 0 : i32
    %c0_i32_0 = arith.constant 0 : i32
    %c0_i32_1 = arith.constant 0 : i32
    return %arg1, %c0_i32, %c0_i32_0, %arg0 : i32, i32, i32, i32
  }
  func.func @transform_6(%arg0: i32, %arg1: i32) -> (i32, i32, i32) {
    %c0_i32 = arith.constant 0 : i32
    %c0_i32_0 = arith.constant 0 : i32
    return %arg1, %c0_i32, %arg0 : i32, i32, i32
  }
  func.func @transform_7(%arg0: i32, %arg1: i32) -> (i32, i32, i32) {
    %c0_i32 = arith.constant 0 : i32
    %c0_i32_0 = arith.constant 0 : i32
    return %arg1, %c0_i32, %arg0 : i32, i32, i32
  }
}

</mosaic_0001>

<bundles_post_ra>
// kernel: tpu_custom_call.1
= control target key start
LH: loop header
LB: loop body
LE: loop exit
PB: predicated region body
PF: predicated region fallthrough
CT: control target
= control target key end

     0   :  { %s4105_s0 = inlined_call_operand.vmem [shape: bf16[2,9,9,128], index: 0, kind: input, shape index: {}]   ;;  %s4106_s1 = inlined_call_operand.vmem [shape: bf16[2,9,9,128], index: 1, kind: input, shape index: {}]   ;;  %s4107_s2 = inlined_call_operand.vmem [shape: bf16[2,9,9,128], index: 2, kind: input, shape index: {}]   ;;  %s4108_s3 = inlined_call_operand.vmem [shape: bf16[2,9,9,128], index: 3, kind: input, shape index: {}]   ;;  %s4109_s4 = inlined_call_operand.vmem [shape: bf16[9,128,128], index: 4, kind: input, shape index: {}]   ;;  %s4110_s5 = inlined_call_operand.hbm [shape: bf16[2,8,8,128], index: 5, kind: output, shape index: {0}]   ;;  %s4111_s6 = inlined_call_operand.hbm [shape: f32[2,1,128], index: 6, kind: output, shape index: {1}]   ;;  %s4112_s7 = inlined_call_operand.hbm [shape: f32[2,1,128], index: 7, kind: output, shape index: {2}]  }
   0x1   :  { %4116 = sst [smem:[#allocation14_spill]] %s4105_s0 }
   0x2   :  { %13 = vsyncpa [#allocation3], 0 }
   0x3   :  { %15 = vsyncpa [#allocation3 + $0x1], 0 }
   0x4   :  { %16 = vsyncpa [#allocation5], 0 }
   0x5   :  { %18 = vsyncpa [#allocation5 + $0x1], 0  ;;  %s3517_s24 = smov 0   ;;  %s3519_s25 = smov 0  }
   0x6   :  { %s3521_s26 = smov 0   ;;  %s3523_s27 = smov 0  }
   0x7   :  { %s3525_s28 = smov 0   ;;  %s3527_s29 = smov 0  }
   0x8 LB: > { %s4114_s30 = sadd.s32 4294967295, %s3470_s29   ;;  %s4113_s8 = sadd.s32 4294967294, %s3470_s29   ;;  %s3470_s29 = sphi %s3527_s29, %s24_s29   ;;  %s3466_s28 = sphi %s3525_s28, %s4140_s28   ;;  %s3462_s27 = sphi %s3523_s27, %s4139_s27   ;;  %s3458_s26 = sphi %s3521_s26, %s4138_s26   ;;  %s3454_s25 = sphi %s3519_s25, %s4137_s25   ;;  %s3450_s24 = sphi %s3517_s24, %s4136_s24  }
   0x9   : > { %s33_s9 = sadd.s32 1, %s3466_s28  ;;  %s175_s10 = sadd.s32 1, %s3458_s26 }
   0xa   : > { %p34_p0 = scmp.ge.s32.totalorder %s33_s9, 2  ;;  %p185_p1 = scmp.ne.s32.totalorder %s3458_s26, %s3454_s25 }
   0xb   : > { %p186_p2 = scmp.eq.s32.totalorder %s4114_s30, 1  ;;  %p191_p3 = scmp.ne.s32.totalorder %s3454_s25, %s3450_s24 }
   0xc   : > { %s4142_s9 = smov (%p34_p0, %s33_s9), 0  ;;  %p192_p5 = scmp.eq.s32.totalorder %s4113_s8, 1 }
   0xd   : > { %p3559_p4 = por %p186_p2, %p185_p1  ;;  %s170_s12 = ssub.s32 %s3466_s28, %s4142_s9 }
   0xe   : > { %p2529_p6 = scmp.ge.s32.totalorder %s3470_s29, 1  ;;  %p173_p7 = scmp.eq.s32.totalorder %s170_s12, 0 }
   0xf   : > { %p3568_p8 = por %p192_p5, %p191_p3  ;;  %p305_p9 = scmp.lt.s32.totalorder %s3470_s29, 3 }
  0x10   : > { %s3574_s14 = scalar_select %p173_p7, %s3458_s26, %s175_s10  }
  0x11   : > { %p306_p10 = pnand %p2529_p6, %p305_p9 }
  0x13   : > { %309 = sbr.rel (%p306_p10) target bundleno = 457 (0x1c9), region = 40 }
  0x18   : > { %v3242_v0 = vld [vmem:[%s4109_s4 + $0x78] sm:$0xff]   ;;  %p364_p11 = scmp.lt.s32.totalorder %s3462_s27, 1  ;;  %v3244_v2 = vld [vmem:[%s4109_s4 + $0x70] sm:$0xff]   ;;  %v3246_v4 = vld [vmem:[%s4109_s4 + $0x68] sm:$0xff]   ;;  %s4119_s0 = sld [smem:[#allocation14_spill]] }
  0x19   : > { %v3243_v1 = vld [vmem:[%s4109_s4 + $0x38] sm:$0xff]   ;;  %2942 = vmatprep.subr.bf16.mxu0 %v3242_v0  ;;  %v3245_v3 = vld [vmem:[%s4109_s4 + $0x30] sm:$0xff]   ;;  %v3247_v5 = vld [vmem:[%s4109_s4 + $0x28] sm:$0xff]   ;;  %vm728_vm0 = vsmask.f32 3328  ;;  %s3960_s12 = sand.u32 1, %s3454_s25  }
  0x1a   : > { %2966 = vmatprep.subr.bf16.mxu1 %v3243_v1  ;;  %2943 = vmatpush3.bf16.msra.mxu0 %v3242_v0  ;;  %s365_s16 = scalar_select %p364_p11, %s3462_s27, 1  ;;  %v3248_v6 = vld [vmem:[%s4109_s4 + $0x60] sm:$0xff]   ;;  %v3250_v8 = vld [vmem:[%s4109_s4 + $0x58] sm:$0xff]   ;;  %v3252_v10 = vld [vmem:[%s4109_s4 + $0x50] sm:$0xff]   ;;  %vm729_vm1 = vsmask.f32 7440 }
  0x1b   : > { %2967 = vmatpush3.bf16.msra.mxu1 %v3243_v1  ;;  %2944 = vmatprep.subr.bf16.mxu0 %v3244_v2  ;;  %v3249_v7 = vld [vmem:[%s4109_s4 + $0x20] sm:$0xff]   ;;  %v3251_v9 = vld [vmem:[%s4109_s4 + $0x18] sm:$0xff]   ;;  %v3253_v11 = vld [vmem:[%s4109_s4 + $0x10] sm:$0xff]   ;;  %s2530_s15 = sshll.u32 %s3960_s12, 5  ;;  %s2810_s30 = sshll.u32 %s3462_s27, 9 }
  0x1c   : > { %2968 = vmatprep.subr.bf16.mxu1 %v3245_v3  ;;  %s3602_s21 = smul.u32 72, %s365_s16  ;;  %v3254_v14 = vld [vmem:[%s4109_s4 + $0x48] sm:$0xff]   ;;  %v3256_v16 = vld [vmem:[%s4109_s4 + $0x40] sm:$0xff]   ;;  %v3262_v19 = vld [vmem:[%s4109_s4 + $0xb8] sm:$0xff]   ;;  %s2296_s23 = scalar_lea.sflag [#allocation3], %s3960_s12 }
  0x1d   : > { %v3255_v15 = vld [vmem:[%s4109_s4 + $0x8] sm:$0xff]   ;;  %v3257_v17 = vld [vmem:[%s4109_s4] sm:$0xff]   ;;  %v3263_v20 = vld [vmem:[%s4109_s4 + $0xf8] sm:$0xff]   ;;  %s3472_s8 = smov [#allocation2]  }
  0x1e   : > { %2945 = vmatpush3.bf16.msra.mxu0 %v3244_v2  ;;  %s3614_s18 = scalar_lea.vmem %s4106_s1, %s3602_s21  ;;  %s3623_s22 = scalar_lea.vmem %s4119_s0, %s3602_s21  ;;  %v3264_v22 = vld [vmem:[%s4109_s4 + $0xb0] sm:$0xff]   ;;  %v3266_v26 = vld [vmem:[%s4109_s4 + $0xa8] sm:$0xff]   ;;  %v3268_v28 = vld [vmem:[%s4109_s4 + $0xa0] sm:$0xff]  }
  0x1f   : > { %2969 = vmatpush3.bf16.msra.mxu1 %v3245_v3  ;;  %2946 = vmatprep.subr.bf16.mxu0 %v3246_v4  ;;  %v3258_v12 = vld [vmem:[%s3614_s18] ss:$8 sps:$4 sm:$0xff]   ;;  %v3260_v18 = vld [vmem:[%s3614_s18 + $0x10] ss:$8 sps:$4 sm:$0xff]   ;;  %v713_v33 = vld [vmem:[%s3623_s22 + $0x4] sm:$0x1]  ;;  %s3689_s17 = scalar_lea.vmem %s4107_s2, %s3602_s21  ;;  %s3769_s20 = scalar_lea.vmem %s4108_s3, %s3602_s21 }
  0x20   : > { %2970 = vmatprep.subr.bf16.mxu1 %v3247_v5  ;;  %v3259_v13 = vld [vmem:[%s3623_s22] ss:$8 sps:$4 sm:$0xff]   ;;  %2958 = vmatprep.mubr.bf16.mxu0 %v3258_v12  ;;  %v3261_v21 = vld [vmem:[%s3623_s22 + $0x10] ss:$8 sps:$4 sm:$0xff]   ;;  %v715_v35 = vld [vmem:[%s3623_s22 + $0xc] sm:$0x1] }
  0x21   : > { %2982 = vmatprep.mubr.bf16.mxu1 %v3259_v13  ;;  %v3265_v23 = vld [vmem:[%s4109_s4 + $0xf0] sm:$0xff]   ;;  %v3272_v24 = vld [vmem:[%s3614_s18 + $0x20] ss:$8 sps:$4 sm:$0xff]   ;;  %v3270_v36 = vld [vmem:[%s4109_s4 + $0x98] sm:$0xff]   ;;  %v741_v39 = vshll.u32 %v713_v33, 16  ;;  %v755_v44 = vshll.u32 %v715_v35, 16 }
  0x22   : > { %2947 = vmatpush3.bf16.msra.mxu0 %v3246_v4  ;;  %v3273_v25 = vld [vmem:[%s3623_s22 + $0x20] ss:$8 sps:$4 sm:$0xff]   ;;  %v3274_v29 = vld [vmem:[%s3614_s18 + $0x30] ss:$8 sps:$4 sm:$0xff]   ;;  %v717_v45 = vld [vmem:[%s3623_s22 + $0x14] sm:$0x1] }
  0x23   : > { %2971 = vmatpush3.bf16.msra.mxu1 %v3247_v5  ;;  %2948 = vmatprep.subr.bf16.mxu0 %v3248_v6  ;;  %v3267_v27 = vld [vmem:[%s4109_s4 + $0xe8] sm:$0xff]   ;;  %v3269_v30 = vld [vmem:[%s4109_s4 + $0xe0] sm:$0xff]   ;;  %v3275_v31 = vld [vmem:[%s3623_s22 + $0x30] ss:$8 sps:$4 sm:$0xff]   ;;  %v743_v49 = vrot.slane %v741_v39, 5  ;;  %v757_v53 = vrot.slane %v755_v44, 5 }
  0x24   : > { %2972 = vmatprep.subr.bf16.mxu1 %v3249_v7  ;;  %v712_v32 = vld [vmem:[%s3623_s22] sm:$0xf]  ;;  %v714_v34 = vld [vmem:[%s3623_s22 + $0x8] sm:$0xf]  ;;  %v716_v41 = vld [vmem:[%s3623_s22 + $0x10] sm:$0xf] }
  0x25   : > { %v732_v37 = vshrl.u32 %v712_v32, 16  ;;  %v735_v38 = vshll.u32 %v712_v32, 16  ;;  %v746_v40 = vshrl.u32 %v714_v34, 16  ;;  %v3271_v42 = vld [vmem:[%s4109_s4 + $0xd8] sm:$0xff]   ;;  %v749_v43 = vshll.u32 %v714_v34, 16  ;;  %v3276_v60 = vld [vmem:[%s4109_s4 + $0x90] sm:$0xff]   ;;  %vm3697_vm2 = vmor %vm728_vm0, %vm729_vm1 }
  0x26   : > { %2949 = vmatpush3.bf16.msra.mxu0 %v3248_v6  ;;  %v718_v46 = vld [vmem:[%s3623_s22 + $0x18] sm:$0xf]  ;;  %v719_v51 = vld [vmem:[%s3623_s22 + $0x1c] sm:$0x1]  ;;  %v760_v54 = vshrl.u32 %v716_v41, 16  ;;  %v763_v55 = vshll.u32 %v716_v41, 16 }
  0x27   : > { %2973 = vmatpush3.bf16.msra.mxu1 %v3249_v7  ;;  %2950 = vmatprep.subr.bf16.mxu0 %v3250_v8  ;;  %v734_v47 = vrot.slane %v732_v37, 4  ;;  %v737_v48 = vrot.slane %v735_v38, 5  ;;  %v748_v50 = vrot.slane %v746_v40, 4  ;;  %v751_v52 = vrot.slane %v749_v43, 5  ;;  %v3282_v2 = vld [vmem:[%s3689_s17] ss:$8 sps:$4 sm:$0xff]  }
  0x28   : > { %2974 = vmatprep.subr.bf16.mxu1 %v3251_v9  ;;  %v769_v57 = vshll.u32 %v717_v45, 16  ;;  %v774_v58 = vshrl.u32 %v718_v46, 16  ;;  %v777_v59 = vshll.u32 %v718_v46, 16  ;;  %v762_v63 = vrot.slane %v760_v54, 4  ;;  %v3277_v3 = vld [vmem:[%s4109_s4 + $0xd0] sm:$0xff]   ;;  %v3278_v12 = vld [vmem:[%s4109_s4 + $0x88] sm:$0xff]  }
  0x29   : > { %v738_v56 = vor.u32 %v737_v48, %v734_v47  ;;  %v752_v62 = vor.u32 %v751_v52, %v748_v50  ;;  %v765_v0 = vrot.slane %v763_v55, 5  ;;  %v783_v1 = vshll.u32 %v719_v51, 16  ;;  %v724_v32 = vld [vmem:[%s3623_s22 + $0x30] sm:$0xf]  ;;  %v726_v41 = vld [vmem:[%s3623_s22 + $0x38] sm:$0xf] }
  0x2a   : > { %2951 = vmatpush3.bf16.msra.mxu0 %v3250_v8  ;;  %v776_v5 = vrot.slane %v774_v58, 4  ;;  %v779_v6 = vrot.slane %v777_v59, 5  ;;  %v816_v37 = vshrl.u32 %v724_v32, 16  ;;  %v727_v45 = vld [vmem:[%s3623_s22 + $0x3c] sm:$0x1]  ;;  %v830_v50 = vshrl.u32 %v726_v41, 16 }
  0x2b   : > { %2975 = vmatpush3.bf16.msra.mxu1 %v3251_v9  ;;  %2952 = vmatprep.subr.bf16.mxu0 %v3252_v10  ;;  %v739_v4 = vrot.slane %v738_v56, 4  ;;  %v753_v7 = vrot.slane %v752_v62, 4  ;;  %v766_v8 = vor.u32 %v765_v0, %v762_v63  ;;  %v3705_v9 = vrot.slane %v769_v57, 5  ;;  %v3283_v52 = vld [vmem:[%s4109_s4 + $0x138] sm:$0xff]   ;;  %s351_s21 = scalar_lea.vmem [#allocation2], %s2530_s15 }
  0x2c   : > { %2976 = vmatprep.subr.bf16.mxu1 %v3253_v11  ;;  %v818_v46 = vrot.slane %v816_v37, 4  ;;  %v833_v51 = vshll.u32 %v726_v41, 16  ;;  %v839_v54 = vshll.u32 %v727_v45, 16  ;;  %v3284_v55 = vld [vmem:[%s4109_s4 + $0x178] sm:$0xff]   ;;  %v832_v59 = vrot.slane %v830_v50, 4  ;;  %s2318_s16 = sshll.u32 %s351_s21, 4  ;;  %s3980_s16 = int_to_ptr.vmem [resolvable:$true] %s2318_s16 }
  0x2d   : > { %v758_v13 = vsel %vm3697_vm2, %v753_v7, %v757_v53  ;;  %v3285_v56 = vld [vmem:[%s3689_s17 + $0x10] ss:$8 sps:$4 sm:$0xff]   ;;  %v1342_v41 = vld [vmem:[%s3689_s17 + $0x14] sm:$0x1]  ;;  %s3338_s10 = scalar_lea.vmem %s3980_s16, 512 }
  0x2e   : > { %2953 = vmatpush3.bf16.msra.mxu0 %v3252_v10  ;;  %v744_v10 = vsel %vm3697_vm2, %v739_v4, %v743_v49  ;;  %v3287_v7 = vld [vmem:[%s4109_s4 + $0x170] sm:$0xff]   ;;  %p3339_p12 = scmp.ne.s32.totalorder %s3980_s16, %s3338_s10 }
  0x2f   : > { %2977 = vmatpush3.bf16.msra.mxu1 %v3253_v11  ;;  %2954 = vmatprep.subr.bf16.mxu0 %v3254_v14  ;;  %v780_v11 = vor.u32 %v779_v6, %v776_v5  ;;  %v841_v5 = vrot.slane %v839_v54, 5  ;;  %v3290_v6 = vld [vmem:[%s3689_s17 + $0x20] ss:$8 sps:$4 sm:$0xff]  }
  0x30   : > { %2978 = vmatprep.subr.bf16.mxu1 %v3255_v15  ;;  %p3340_p13 = pnand %p3339_p12, %p3559_p4 }
  0x32   : > { %2955 = vmatpush3.bf16.msra.mxu0 %v3254_v14  ;;  %v767_v14 = vrot.slane %v766_v8, 4  ;;  %p3341_p0 = pneg %p3340_p13 }
  0x33   : > { %2979 = vmatpush3.bf16.msra.mxu1 %v3255_v15  ;;  %2956 = vmatprep.subr.bf16.mxu0 %v3256_v16  ;;  %v785_v15 = vrot.slane %v783_v1, 5  ;;  %v3286_v1 = vld [vmem:[%s4109_s4 + $0x130] sm:$0xff]  }
  0x34   : > { %2980 = vmatprep.subr.bf16.mxu1 %v3257_v17 }
  0x36   : > { %2957 = vmatpush3.bf16.msra.mxu0 %v3256_v16  ;;  %v3279_v16 = vld [vmem:[%s4109_s4 + $0xc8] sm:$0xff]  }
  0x37   : > { %2981 = vmatpush3.bf16.msra.mxu1 %v3257_v17  ;;  %2990 = vmatprep.subr.bf16.mxu0 %v3262_v19  ;;  %v2591_v17 = vcombine.low %v744_v10, %v758_v13  ;;  %v3288_v10 = vld [vmem:[%s4109_s4 + $0x128] sm:$0xff]  }
  0x38   : > { %3014 = vmatprep.subr.bf16.mxu1 %v3263_v20  ;;  %v3289_v13 = vld [vmem:[%s4109_s4 + $0x168] sm:$0xff]  }
  0x39   : > { %2959 = vmatmul.mubr.bf16.vlgmr.msra.gmra.mxu0 %v3260_v18  ;;  %v781_v18 = vrot.slane %v780_v11, 4 }
  0x3a   : > { %2983 = vmatmul.mubr.bf16.vlgmr.msra.gmra.mxu1 %v3261_v21  ;;  %2991 = vmatpush3.bf16.msra.mxu0 %v3262_v19  ;;  %v720_v19 = vld [vmem:[%s3623_s22 + $0x20] sm:$0xf] }
  0x3b   : > { %3015 = vmatpush3.bf16.msra.mxu1 %v3263_v20  ;;  %2992 = vmatprep.subr.bf16.mxu0 %v3264_v22  ;;  %v721_v20 = vld [vmem:[%s3623_s22 + $0x24] sm:$0x1] }
  0x3c   : > { %3016 = vmatprep.subr.bf16.mxu1 %v3265_v23  ;;  %2962 = vmatprep.mubr.bf16.mxu0 %v3272_v24  ;;  %v3280_v21 = vld [vmem:[%s4109_s4 + $0x80] sm:$0xff]   ;;  %v723_v24 = vld [vmem:[%s3623_s22 + $0x2c] sm:$0x1] }
  0x3d   : > { %2986 = vmatprep.mubr.bf16.mxu1 %v3273_v25  ;;  %v788_v25 = vshrl.u32 %v720_v19, 16  ;;  %v811_v35 = vshll.u32 %v723_v24, 16  ;;  %v1340_v24 = vld [vmem:[%s3689_s17 + $0xc] sm:$0x1] }
  0x3e   : > { %2993 = vmatpush3.bf16.msra.mxu0 %v3264_v22  ;;  %v772_v22 = vsel %vm3697_vm2, %v767_v14, %v3705_v9 }
  0x3f   : > { %3017 = vmatpush3.bf16.msra.mxu1 %v3265_v23  ;;  %2994 = vmatprep.subr.bf16.mxu0 %v3266_v26  ;;  %v722_v23 = vld [vmem:[%s3623_s22 + $0x28] sm:$0xf]  ;;  %v790_v33 = vrot.slane %v788_v25, 4  ;;  %v813_v44 = vrot.slane %v811_v35, 5 }
  0x40   : > { %3018 = vmatprep.subr.bf16.mxu1 %v3267_v27 }
  0x41   : > { %2963 = vmatmul.mubr.bf16.gmra.mxu0 %v3274_v29  ;;  %v797_v29 = vshll.u32 %v721_v20, 16  ;;  %v3295_v20 = vld [vmem:[%s4109_s4 + $0x158] sm:$0xff]  }
  0x42   : > { %2995 = vmatpush3.bf16.msra.mxu0 %v3266_v26  ;;  %2987 = vmatmul.mubr.bf16.gmra.mxu1 %v3275_v31  ;;  %v791_v26 = vshll.u32 %v720_v19, 16  ;;  %v805_v31 = vshll.u32 %v722_v23, 16  ;;  %v3302_v19 = vld [vmem:[%s3769_s20] ss:$8 sps:$4 sm:$0xff]  }
  0x43   : > { %3019 = vmatpush3.bf16.msra.mxu1 %v3267_v27  ;;  %2996 = vmatprep.subr.bf16.mxu0 %v3268_v28  ;;  %v3281_v27 = vld [vmem:[%s4109_s4 + $0xc0] sm:$0xff]   ;;  %v799_v38 = vrot.slane %v797_v29, 5 }
  0x44   : > { %3020 = vmatprep.subr.bf16.mxu1 %v3269_v30  ;;  %3030 = vmatprep.mubr.bf16.mxu1 %v3282_v2  ;;  %v793_v34 = vrot.slane %v791_v26, 5  ;;  %v807_v40 = vrot.slane %v805_v31, 5  ;;  %v3296_v31 = vld [vmem:[%s4109_s4 + $0x110] sm:$0xff]  }
  0x45   : > { %3006 = vmatprep.mubr.bf16.mxu0 %v2591_v17  ;;  %v3293_v17 = vld [vmem:[%s4109_s4 + $0x160] sm:$0xff]  }
  0x46   : > { %2997 = vmatpush3.bf16.msra.mxu0 %v3268_v28  ;;  %v786_v28 = vsel %vm3697_vm2, %v781_v18, %v785_v15  ;;  %v794_v43 = vor.u32 %v793_v34, %v790_v33  ;;  %v3291_v15 = vld [vmem:[%s3689_s17 + $0x30] ss:$8 sps:$4 sm:$0xff]  }
  0x47   : > { %3021 = vmatpush3.bf16.msra.mxu1 %v3269_v30  ;;  %2998 = vmatprep.subr.bf16.mxu0 %v3270_v36  ;;  %v802_v30 = vshrl.u32 %v722_v23, 16  ;;  %v2592_v62 = vcombine.low %v772_v22, %v786_v28  ;;  %v3294_v18 = vld [vmem:[%s4109_s4 + $0x118] sm:$0xff]   ;;  %v1338_v22 = vld [vmem:[%s3689_s17 + $0x4] sm:$0x1]  ;;  %v1339_v23 = vld [vmem:[%s3689_s17 + $0x8] sm:$0xf] }
  0x48   : > { %3022 = vmatprep.subr.bf16.mxu1 %v3271_v42  ;;  %v795_v53 = vrot.slane %v794_v43, 4  ;;  %v1368_v28 = vshrl.u32 %v1339_v23, 16  ;;  %v1371_v29 = vshll.u32 %v1339_v23, 16  ;;  %v3297_v34 = vld [vmem:[%s4109_s4 + $0x150] sm:$0xff]   ;;  %v1343_v43 = vld [vmem:[%s3689_s17 + $0x18] sm:$0xf] }
  0x49   : > { %v804_v39 = vrot.slane %v802_v30, 4  ;;  %v1377_v30 = vshll.u32 %v1340_v24, 16  ;;  %v1399_v50 = vshll.u32 %v1343_v43, 16  ;;  %v1350_v24 = vld [vmem:[%s3689_s17 + $0x34] sm:$0x1] }
  0x4a   : > { %2999 = vmatpush3.bf16.msra.mxu0 %v3270_v36  ;;  %v725_v36 = vld [vmem:[%s3623_s22 + $0x34] sm:$0x1]  ;;  %v800_v63 = vsel %vm3697_vm2, %v795_v53, %v799_v38  ;;  %v1373_v37 = vrot.slane %v1371_v29, 5  ;;  %v1351_v29 = vld [vmem:[%s3689_s17 + $0x38] sm:$0xf] }
  0x4b   : > { %3023 = vmatpush3.bf16.msra.mxu1 %v3271_v42  ;;  %3000 = vmatprep.subr.bf16.mxu0 %v3276_v60  ;;  %v819_v42 = vshll.u32 %v724_v32, 16  ;;  %v825_v47 = vshll.u32 %v725_v36, 16  ;;  %v808_v48 = vor.u32 %v807_v40, %v804_v39  ;;  %v1370_v36 = vrot.slane %v1368_v28, 4  ;;  %v1341_v40 = vld [vmem:[%s3689_s17 + $0x10] sm:$0xf] }
  0x4c   : > { %3024 = vmatprep.subr.bf16.mxu1 %v3277_v3  ;;  %v1379_v38 = vrot.slane %v1377_v30, 5  ;;  %v1382_v45 = vshrl.u32 %v1341_v40, 16 }
  0x4d   : > { %v821_v49 = vrot.slane %v819_v42, 5  ;;  %v809_v57 = vrot.slane %v808_v48, 4  ;;  %v827_v0 = vrot.slane %v825_v47, 5  ;;  %v1374_v42 = vor.u32 %v1373_v37, %v1370_v36  ;;  %v3307_v37 = vld [vmem:[%s4109_s4 + $0x1f0] sm:$0xff]  }
  0x4e   : > { %3001 = vmatpush3.bf16.msra.mxu0 %v3276_v60  ;;  %v835_v60 = vrot.slane %v833_v51, 5  ;;  %v1391_v48 = vshll.u32 %v1342_v41, 16  ;;  %v1452_v41 = vshrl.u32 %v1351_v29, 16 }
  0x4f   : > { %3025 = vmatpush3.bf16.msra.mxu1 %v3277_v3  ;;  %3002 = vmatprep.subr.bf16.mxu0 %v3278_v12  ;;  %v822_v58 = vor.u32 %v821_v49, %v818_v46  ;;  %v814_v2 = vsel %vm3697_vm2, %v809_v57, %v813_v44  ;;  %v1344_v44 = vld [vmem:[%s3689_s17 + $0x1c] sm:$0x1]  ;;  %v1385_v46 = vshll.u32 %v1341_v40, 16  ;;  %v1396_v49 = vshrl.u32 %v1343_v43, 16 }
  0x50   : > { %3026 = vmatprep.subr.bf16.mxu1 %v3279_v16  ;;  %v836_v4 = vor.u32 %v835_v60, %v832_v59  ;;  %v2593_v8 = vcombine.low %v800_v63, %v814_v2  ;;  %v1375_v51 = vrot.slane %v1374_v42, 4  ;;  %v1405_v54 = vshll.u32 %v1344_v44, 16  ;;  %v3299_v59 = vld [vmem:[%s4109_s4 + $0x148] sm:$0xff]  }
  0x51   : > { %v823_v3 = vrot.slane %v822_v58, 4  ;;  %v1387_v53 = vrot.slane %v1385_v46, 5  ;;  %v1398_v57 = vrot.slane %v1396_v49, 4  ;;  %v1401_v58 = vrot.slane %v1399_v50, 5  ;;  %v3310_v49 = vld [vmem:[%s4109_s4 + $0x1a8] sm:$0xff]  }
  0x52   : > { %3003 = vmatpush3.bf16.msra.mxu0 %v3278_v12  ;;  %v837_v9 = vrot.slane %v836_v4, 4  ;;  %v1380_v60 = vsel %vm3697_vm2, %v1375_v51, %v1379_v38  ;;  %v1393_v63 = vrot.slane %v1391_v48, 5  ;;  %v1407_v2 = vrot.slane %v1405_v54, 5 }
  0x53   : > { %3027 = vmatpush3.bf16.msra.mxu1 %v3279_v16  ;;  %3004 = vmatprep.subr.bf16.mxu0 %v3280_v21  ;;  %v828_v11 = vsel %vm3697_vm2, %v823_v3, %v827_v0  ;;  %v3292_v16 = vld [vmem:[%s4109_s4 + $0x120] sm:$0xff]   ;;  %v1447_v40 = vshll.u32 %v1350_v24, 16  ;;  %v1455_v43 = vshll.u32 %v1351_v29, 16  ;;  %v1454_v48 = vrot.slane %v1452_v41, 4  ;;  %v2767_v24 = vld [vmem:[%s3623_s22 + $0x28] sm:$0xf] }
  0x54   : > { %3028 = vmatprep.subr.bf16.mxu1 %v3281_v27  ;;  %v842_v12 = vsel %vm3697_vm2, %v837_v9, %v841_v5  ;;  %v3300_v3 = vld [vmem:[%s4109_s4 + $0x100] sm:$0xff]   ;;  %v3304_v9 = vld [vmem:[%s4109_s4 + $0x1b8] sm:$0xff]   ;;  %v3327_v41 = vld [vmem:[%s4109_s4 + $0x230] sm:$0xff]  }
  0x55   : > { %v2594_v14 = vcombine.low %v828_v11, %v842_v12  ;;  %v3301_v5 = vld [vmem:[%s4109_s4 + $0x140] sm:$0xff]   ;;  %v1347_v12 = vld [vmem:[%s3689_s17 + $0x28] sm:$0xf]  ;;  %v1449_v51 = vrot.slane %v1447_v40, 5 }
  0x56   : > { %3005 = vmatpush3.bf16.msra.mxu0 %v3280_v21  ;;  %v1337_v21 = vld [vmem:[%s3689_s17] sm:$0xf]  ;;  %v1346_v11 = vld [vmem:[%s3689_s17 + $0x24] sm:$0x1] }
  0x57   : > { %3029 = vmatpush3.bf16.msra.mxu1 %v3281_v27  ;;  %3038 = vmatprep.subr.bf16.mxu0 %v3283_v52  ;;  %v1354_v25 = vshrl.u32 %v1337_v21, 16  ;;  %v1357_v26 = vshll.u32 %v1337_v21, 16  ;;  %v1363_v27 = vshll.u32 %v1338_v22, 16  ;;  %v1424_v21 = vshrl.u32 %v1347_v12, 16 }
  0x58   : > { %3062 = vmatprep.subr.bf16.mxu1 %v3284_v55  ;;  %v1427_v22 = vshll.u32 %v1347_v12, 16  ;;  %v3320_v12 = vld [vmem:[%s4109_s4 + $0x180] sm:$0xff]  }
  0x59   : > { %3007 = vmatmul.mubr.bf16.vlgmr.msra.gmra.mxu0 %v2592_v62  ;;  %v1356_v32 = vrot.slane %v1354_v25, 4  ;;  %v1359_v33 = vrot.slane %v1357_v26, 5  ;;  %v1365_v35 = vrot.slane %v1363_v27, 5 }
  0x5a   : > { %3031 = vmatmul.mubr.bf16.vlgmr.msra.gmra.mxu1 %v3285_v56  ;;  %3039 = vmatpush3.bf16.msra.mxu0 %v3283_v52  ;;  %v1384_v52 = vrot.slane %v1382_v45, 4  ;;  %v3308_v45 = vld [vmem:[%s3769_s20 + $0x20] ss:$8 sps:$4 sm:$0xff]  }
  0x5b   : > { %3063 = vmatpush3.bf16.msra.mxu1 %v3284_v55  ;;  %3040 = vmatprep.subr.bf16.mxu0 %v3286_v1  ;;  %v1360_v39 = vor.u32 %v1359_v33, %v1356_v32  ;;  %v3298_v55 = vld [vmem:[%s4109_s4 + $0x108] sm:$0xff]   ;;  %v1426_v32 = vrot.slane %v1424_v21, 4  ;;  %v1429_v33 = vrot.slane %v1427_v22, 5  ;;  %v3323_v21 = vld [vmem:[%s3623_s22 + $0x18] ss:$8 sps:$4 sm:$0xff]  }
  0x5c   : > { %3064 = vmatprep.subr.bf16.mxu1 %v3287_v7  ;;  %3010 = vmatprep.mubr.bf16.mxu0 %v2593_v8  ;;  %v1388_v62 = vor.u32 %v1387_v53, %v1384_v52  ;;  %v1345_v8 = vld [vmem:[%s3689_s17 + $0x20] sm:$0xf]  ;;  %v1457_v52 = vrot.slane %v1455_v43, 5  ;;  %v3325_v22 = vld [vmem:[%s4109_s4 + $0x238] sm:$0xff]  }
  0x5d   : > { %3034 = vmatprep.mubr.bf16.mxu1 %v3290_v6  ;;  %v1361_v47 = vrot.slane %v1360_v39, 4  ;;  %v1430_v42 = vor.u32 %v1429_v33, %v1426_v32  ;;  %v2770_v33 = vld [vmem:[%s3623_s22 + $0x34] sm:$0x1] }
  0x5e   : > { %3041 = vmatpush3.bf16.msra.mxu0 %v3286_v1  ;;  %v1402_v1 = vor.u32 %v1401_v58, %v1398_v57  ;;  %v1389_v4 = vrot.slane %v1388_v62, 4  ;;  %v1458_v58 = vor.u32 %v1457_v52, %v1454_v48 }
  0x5f   : > { %3065 = vmatpush3.bf16.msra.mxu1 %v3287_v7  ;;  %3042 = vmatprep.subr.bf16.mxu0 %v3288_v10  ;;  %v1366_v56 = vsel %vm3697_vm2, %v1361_v47, %v1365_v35  ;;  %v1352_v35 = vld [vmem:[%s3689_s17 + $0x3c] sm:$0x1]  ;;  %v1431_v50 = vrot.slane %v1430_v42, 4 }
  0x60   : > { %3066 = vmatprep.subr.bf16.mxu1 %v3289_v13  ;;  %v2675_v0 = vcombine.low %v1366_v56, %v1380_v60  ;;  %v1403_v6 = vrot.slane %v1402_v1, 4  ;;  %v1394_v7 = vsel %vm3697_vm2, %v1389_v4, %v1393_v63  ;;  %v1461_v44 = vshll.u32 %v1352_v35, 16  ;;  %v3309_v56 = vld [vmem:[%s3769_s20 + $0x30] ss:$8 sps:$4 sm:$0xff]   ;;  %v3312_v1 = vld [vmem:[%s4109_s4 + $0x1a0] sm:$0xff]  }
  0x61   : > { %3011 = vmatmul.mubr.bf16.gmra.mxu0 %v2594_v14  ;;  %v3305_v14 = vld [vmem:[%s4109_s4 + $0x1f8] sm:$0xff]   ;;  %v1459_v63 = vrot.slane %v1458_v58, 4  ;;  %v3322_v4 = vld [vmem:[%s3623_s22 + $0x8] ss:$8 sps:$4 sm:$0xff]   ;;  %v2037_v35 = vshll.u32 %v2767_v24, 16 }
  0x62   : > { %3043 = vmatpush3.bf16.msra.mxu0 %v3288_v10  ;;  %3035 = vmatmul.mubr.bf16.gmra.mxu1 %v3291_v15  ;;  %v1408_v10 = vsel %vm3697_vm2, %v1403_v6, %v1407_v2  ;;  %v3324_v6 = vld [vmem:[%s3614_s18 + $0x8] ss:$8 sps:$4 sm:$0xff]  }
  0x63   : > { %3067 = vmatpush3.bf16.msra.mxu1 %v3289_v13  ;;  %3044 = vmatprep.subr.bf16.mxu0 %v3292_v16  ;;  %v1348_v13 = vld [vmem:[%s3689_s17 + $0x2c] sm:$0x1]  ;;  %v2676_v15 = vcombine.low %v1394_v7, %v1408_v10  ;;  %v3315_v7 = vld [vmem:[%s4109_s4 + $0x1d8] sm:$0xff]  }
  0x64   : > { %3068 = vmatprep.subr.bf16.mxu1 %v3293_v17  ;;  %3054 = vmatprep.mubr.bf16.mxu0 %v3302_v19  ;;  %v1349_v19 = vld [vmem:[%s3689_s17 + $0x30] sm:$0xf]  ;;  %v1433_v23 = vshll.u32 %v1348_v13, 16  ;;  %v3318_v10 = vld [vmem:[%s4109_s4 + $0x188] sm:$0xff]   ;;  %v3321_v13 = vld [vmem:[%s4109_s4 + $0x1c0] sm:$0xff]   ;;  %s3978_s17 = scalar_lea.hbm %s4110_s5, %s2810_s30 }
  0x65   : > { %3078 = vmatprep.mubr.bf16.mxu1 %v2675_v0  ;;  %v1438_v25 = vshrl.u32 %v1349_v19, 16  ;;  %v1441_v30 = vshll.u32 %v1349_v19, 16  ;;  %v3330_v58 = vld [vmem:[%s4109_s4 + $0x228] sm:$0xff]  }
  0x66   : > { %3045 = vmatpush3.bf16.msra.mxu0 %v3292_v16  ;;  %v1410_v16 = vshrl.u32 %v1345_v8, 16 }
  0x67   : > { %3069 = vmatpush3.bf16.msra.mxu1 %v3293_v17  ;;  %3046 = vmatprep.subr.bf16.mxu0 %v3294_v18  ;;  %v1413_v17 = vshll.u32 %v1345_v8, 16  ;;  %v1440_v36 = vrot.slane %v1438_v25, 4  ;;  %v1443_v39 = vrot.slane %v1441_v30, 5  ;;  %v3316_v8 = vld [vmem:[%s4109_s4 + $0x190] sm:$0xff]   ;;  %v2768_v25 = vld [vmem:[%s3623_s22 + $0x2c] sm:$0x1] }
  0x68   : > { %3070 = vmatprep.subr.bf16.mxu1 %v3295_v20  ;;  %v1412_v26 = vrot.slane %v1410_v16, 4  ;;  %v2761_v16 = vld [vmem:[%s3623_s22 + $0x10] sm:$0xf] }
  0x69   : > { %v1415_v27 = vrot.slane %v1413_v17, 5  ;;  %v1444_v47 = vor.u32 %v1443_v39, %v1440_v36  ;;  %v2762_v17 = vld [vmem:[%s3623_s22 + $0x14] sm:$0x1]  ;;  %v2769_v30 = vld [vmem:[%s3623_s22 + $0x30] sm:$0xf] }
  0x6a   : > { %3047 = vmatpush3.bf16.msra.mxu0 %v3294_v18  ;;  %v1419_v18 = vshll.u32 %v1346_v11, 16  ;;  %v3319_v11 = vld [vmem:[%s4109_s4 + $0x1c8] sm:$0xff]   ;;  %v2001_v32 = vshll.u32 %v2762_v17, 16  ;;  %v3326_v36 = vld [vmem:[%s3614_s18 + $0x18] ss:$8 sps:$4 sm:$0xff]   ;;  %v2048_v39 = vshrl.u32 %v2769_v30, 16 }
  0x6b   : > { %3071 = vmatpush3.bf16.msra.mxu1 %v3295_v20  ;;  %3048 = vmatprep.subr.bf16.mxu0 %v3296_v31  ;;  %v3303_v20 = vld [vmem:[%s3769_s20 + $0x10] ss:$8 sps:$4 sm:$0xff]   ;;  %v1416_v38 = vor.u32 %v1415_v27, %v1412_v26  ;;  %v1445_v54 = vrot.slane %v1444_v47, 4  ;;  %v2051_v40 = vshll.u32 %v2769_v30, 16 }
  0x6c   : > { %3072 = vmatprep.subr.bf16.mxu1 %v3297_v34  ;;  %v1421_v28 = vrot.slane %v1419_v18, 5  ;;  %v2050_v48 = vrot.slane %v2048_v39, 4 }
  0x6d   : > { %v1417_v46 = vrot.slane %v1416_v38, 4  ;;  %v1450_v62 = vsel %vm3697_vm2, %v1445_v54, %v1449_v51  ;;  %v2043_v38 = vshll.u32 %v2768_v25, 16 }
  0x6e   : > { %3049 = vmatpush3.bf16.msra.mxu0 %v3296_v31  ;;  %v3306_v31 = vld [vmem:[%s4109_s4 + $0x1b0] sm:$0xff]  }
  0x6f   : > { %3073 = vmatpush3.bf16.msra.mxu1 %v3297_v34  ;;  %3050 = vmatprep.subr.bf16.mxu0 %v3298_v55  ;;  %v1435_v34 = vrot.slane %v1433_v23, 5  ;;  %v1422_v53 = vsel %vm3697_vm2, %v1417_v46, %v1421_v28  ;;  %v1995_v23 = vshll.u32 %v2761_v16, 16  ;;  %v3328_v46 = vld [vmem:[%s3623_s22 + $0x28] ss:$8 sps:$4 sm:$0xff]  }
  0x70   : > { %3074 = vmatprep.subr.bf16.mxu1 %v3299_v59 }
  0x71   : > { %v1436_v57 = vsel %vm3697_vm2, %v1431_v50, %v1435_v34  ;;  %v2034_v34 = vshrl.u32 %v2767_v24, 16  ;;  %v3331_v50 = vld [vmem:[%s3614_s18 + $0x28] ss:$8 sps:$4 sm:$0xff]  }
  0x72   : > { %3051 = vmatpush3.bf16.msra.mxu0 %v3298_v55  ;;  %v1463_v55 = vrot.slane %v1461_v44, 5  ;;  %v2677_v60 = vcombine.low %v1422_v53, %v1436_v57  ;;  %v2039_v44 = vrot.slane %v2037_v35, 5  ;;  %v2003_v53 = vrot.slane %v2001_v32, 5  ;;  %v2774_v32 = vld [vmem:[%s3623_s22 + $0x44] sm:$0x1] }
  0x73   : > { %3075 = vmatpush3.bf16.msra.mxu1 %v3299_v59  ;;  %3052 = vmatprep.subr.bf16.mxu0 %v3300_v3  ;;  %v3311_v59 = vld [vmem:[%s4109_s4 + $0x1e8] sm:$0xff]   ;;  %v2036_v43 = vrot.slane %v2034_v34, 4 }
  0x74   : > { %3076 = vmatprep.subr.bf16.mxu1 %v3301_v5  ;;  %v1464_v0 = vsel %vm3697_vm2, %v1459_v63, %v1463_v55  ;;  %v2045_v55 = vrot.slane %v2043_v38, 5 }
  0x75   : > { %v2678_v2 = vcombine.low %v1450_v62, %v1464_v0  ;;  %v2040_v54 = vor.u32 %v2039_v44, %v2036_v43  ;;  %v3329_v62 = vld [vmem:[%s3623_s22 + $0x38] ss:$8 sps:$4 sm:$0xff]  }
  0x76   : > { %3053 = vmatpush3.bf16.msra.mxu0 %v3300_v3  ;;  %v3313_v3 = vld [vmem:[%s4109_s4 + $0x1e0] sm:$0xff]  }
  0x77   : > { %3077 = vmatpush3.bf16.msra.mxu1 %v3301_v5  ;;  %3086 = vmatprep.subr.bf16.mxu0 %v3304_v9  ;;  %v3314_v5 = vld [vmem:[%s4109_s4 + $0x198] sm:$0xff]  }
  0x78   : > { %3110 = vmatprep.subr.bf16.mxu1 %v3305_v14 }
  0x79   : > { %3055 = vmatmul.mubr.bf16.vlgmr.msra.gmra.mxu0 %v3303_v20  ;;  %v1992_v20 = vshrl.u32 %v2761_v16, 16 }
  0x7a   : > { %3079 = vmatmul.mubr.bf16.vlgmr.msra.gmra.mxu1 %v2676_v15  ;;  %3087 = vmatpush3.bf16.msra.mxu0 %v3304_v9  ;;  %v3317_v9 = vld [vmem:[%s4109_s4 + $0x1d0] sm:$0xff]   ;;  %v2760_v15 = vld [vmem:[%s3623_s22 + $0xc] sm:$0x1] }
  0x7b   : > { %3111 = vmatpush3.bf16.msra.mxu1 %v3305_v14  ;;  %3088 = vmatprep.subr.bf16.mxu0 %v3306_v31  ;;  %v2759_v14 = vld [vmem:[%s3623_s22 + $0x8] sm:$0xf]  ;;  %v1987_v28 = vshll.u32 %v2760_v15, 16  ;;  %v1994_v29 = vrot.slane %v1992_v20, 4  ;;  %v3334_v15 = vld [vmem:[%s4109_s4 + $0x218] sm:$0xff]   ;;  %v3335_v20 = vld [vmem:[%s4109_s4 + $0x210] sm:$0xff]  }
  0x7c   : > { %3112 = vmatprep.subr.bf16.mxu1 %v3307_v37  ;;  %3058 = vmatprep.mubr.bf16.mxu0 %v3308_v45  ;;  %v1978_v18 = vshrl.u32 %v2759_v14, 16  ;;  %v1981_v19 = vshll.u32 %v2759_v14, 16  ;;  %v2057_v45 = vshll.u32 %v2770_v33, 16 }
  0x7d   : > { %3082 = vmatprep.mubr.bf16.mxu1 %v2677_v60  ;;  %v1989_v47 = vrot.slane %v1987_v28, 5 }
  0x7e   : > { %3089 = vmatpush3.bf16.msra.mxu0 %v3306_v31  ;;  %v1980_v26 = vrot.slane %v1978_v18, 4  ;;  %v1983_v27 = vrot.slane %v1981_v19, 5  ;;  %v1997_v31 = vrot.slane %v1995_v23, 5  ;;  %v2059_v57 = vrot.slane %v2057_v45, 5 }
  0x7f   : > { %3113 = vmatpush3.bf16.msra.mxu1 %v3307_v37  ;;  %3090 = vmatprep.subr.bf16.mxu0 %v3310_v49 }
  0x80   : > { %3114 = vmatprep.subr.bf16.mxu1 %v3311_v59  ;;  %v1984_v37 = vor.u32 %v1983_v27, %v1980_v26  ;;  %v1998_v42 = vor.u32 %v1997_v31, %v1994_v29  ;;  %v2766_v26 = vld [vmem:[%s3623_s22 + $0x24] sm:$0x1]  ;;  %v2772_v31 = vld [vmem:[%s3623_s22 + $0x3c] sm:$0x1] }
  0x81   : > { %3059 = vmatmul.mubr.bf16.gmra.mxu0 %v3309_v56  ;;  %v2071_v39 = vshll.u32 %v2772_v31, 16 }
  0x82   : > { %3091 = vmatpush3.bf16.msra.mxu0 %v3310_v49  ;;  %3083 = vmatmul.mubr.bf16.gmra.mxu1 %v2678_v2  ;;  %v2053_v49 = vrot.slane %v2051_v40, 5  ;;  %v1985_v51 = vrot.slane %v1984_v37, 4  ;;  %v1999_v52 = vrot.slane %v1998_v42, 4  ;;  %v3336_v37 = vld [vmem:[%s4109_s4 + $0x208] sm:$0xff]  }
  0x83   : > { %3115 = vmatpush3.bf16.msra.mxu1 %v3311_v59  ;;  %3092 = vmatprep.subr.bf16.mxu0 %v3312_v1  ;;  %v2041_v59 = vrot.slane %v2040_v54, 4 }
  0x84   : > { %3116 = vmatprep.subr.bf16.mxu1 %v3313_v3  ;;  %3102 = vmatprep.mubr.bf16.mxu0 %v3322_v4  ;;  %v2054_v56 = vor.u32 %v2053_v49, %v2050_v48  ;;  %v1990_v63 = vsel %vm3697_vm2, %v1985_v51, %v1989_v47  ;;  %v2004_v0 = vsel %vm3697_vm2, %v1999_v52, %v2003_v53  ;;  %v3333_v4 = vld [vmem:[%s4109_s4 + $0x220] sm:$0xff]   ;;  %v2073_v48 = vrot.slane %v2071_v39, 5 }
  0x85   : > { %3126 = vmatprep.mubr.bf16.mxu1 %v3324_v6  ;;  %v2046_v2 = vsel %vm3697_vm2, %v2041_v59, %v2045_v55  ;;  %v2765_v6 = vld [vmem:[%s3623_s22 + $0x20] sm:$0xf] }
  0x86   : > { %3093 = vmatpush3.bf16.msra.mxu0 %v3312_v1  ;;  %v2055_v60 = vrot.slane %v2054_v56, 4  ;;  %v3332_v1 = vld [vmem:[%s3614_s18 + $0x38] ss:$8 sps:$4 sm:$0xff]   ;;  %v2023_v14 = vshll.u32 %v2765_v6, 16 }
  0x87   : > { %3117 = vmatpush3.bf16.msra.mxu1 %v3313_v3  ;;  %3094 = vmatprep.subr.bf16.mxu0 %v3314_v5 }
  0x88   : > { %3118 = vmatprep.subr.bf16.mxu1 %v3315_v7  ;;  %v2060_v3 = vsel %vm3697_vm2, %v2055_v60, %v2059_v57  ;;  %v2025_v25 = vrot.slane %v2023_v14, 5 }
  0x8a   : > { %3095 = vmatpush3.bf16.msra.mxu0 %v3314_v5  ;;  %v2763_v5 = vld [vmem:[%s3623_s22 + $0x18] sm:$0xf] }
  0x8b   : > { %3119 = vmatpush3.bf16.msra.mxu1 %v3315_v7  ;;  %3096 = vmatprep.subr.bf16.mxu0 %v3316_v8  ;;  %v2791_v7 = vcombine.low %v1990_v63, %v2004_v0 }
  0x8c   : > { %3120 = vmatprep.subr.bf16.mxu1 %v3317_v9 }
  0x8e   : > { %3097 = vmatpush3.bf16.msra.mxu0 %v3316_v8  ;;  %v2771_v8 = vld [vmem:[%s3623_s22 + $0x38] sm:$0xf] }
  0x8f   : > { %3121 = vmatpush3.bf16.msra.mxu1 %v3317_v9  ;;  %3098 = vmatprep.subr.bf16.mxu0 %v3318_v10  ;;  %v2773_v9 = vld [vmem:[%s3623_s22 + $0x40] sm:$0xf]  ;;  %v2062_v16 = vshrl.u32 %v2771_v8, 16  ;;  %v2065_v17 = vshll.u32 %v2771_v8, 16 }
  0x90   : > { %3122 = vmatprep.subr.bf16.mxu1 %v3319_v11  ;;  %v2076_v18 = vshrl.u32 %v2773_v9, 16  ;;  %v2079_v19 = vshll.u32 %v2773_v9, 16 }
  0x91   : > { %v2064_v27 = vrot.slane %v2062_v16, 4  ;;  %v2067_v28 = vrot.slane %v2065_v17, 5 }
  0x92   : > { %3099 = vmatpush3.bf16.msra.mxu0 %v3318_v10  ;;  %v2793_v10 = vcombine.low %v2046_v2, %v2060_v3  ;;  %v2078_v29 = vrot.slane %v2076_v18, 4  ;;  %v2081_v30 = vrot.slane %v2079_v19, 5 }
  0x93   : > { %3123 = vmatpush3.bf16.msra.mxu1 %v3319_v11  ;;  %3100 = vmatprep.subr.bf16.mxu0 %v3320_v12  ;;  %v2006_v11 = vshrl.u32 %v2763_v5, 16  ;;  %v2068_v38 = vor.u32 %v2067_v28, %v2064_v27 }
  0x94   : > { %3124 = vmatprep.subr.bf16.mxu1 %v3321_v13  ;;  %v2082_v40 = vor.u32 %v2081_v30, %v2078_v29 }
  0x95   : > { %v2069_v47 = vrot.slane %v2068_v38, 4 }
  0x96   : > { %3101 = vmatpush3.bf16.msra.mxu0 %v3320_v12  ;;  %v2009_v12 = vshll.u32 %v2763_v5, 16  ;;  %v2083_v49 = vrot.slane %v2082_v40, 4 }
  0x97   : > { %3125 = vmatpush3.bf16.msra.mxu1 %v3321_v13  ;;  %3134 = vmatprep.subr.bf16.mxu0 %v3325_v22  ;;  %v2020_v13 = vshrl.u32 %v2765_v6, 16  ;;  %v2074_v53 = vsel %vm3697_vm2, %v2069_v47, %v2073_v48 }
  0x98   : > { %3158 = vmatprep.subr.bf16.mxu1 %v3325_v22  ;;  %v2011_v23 = vrot.slane %v2009_v12, 5 }
  0x99   : > { %3103 = vmatmul.mubr.bf16.vlgmr.msra.gmra.mxu0 %v3323_v21  ;;  %v2764_v21 = vld [vmem:[%s3623_s22 + $0x1c] sm:$0x1]  ;;  %v2022_v24 = vrot.slane %v2020_v13, 4  ;;  %s3342_s22 = sshll.u32 %s3472_s8, 4  ;;  %s3343_s22 = int_to_ptr.vmem [resolvable:$false] %s3342_s22 }
  0x9a   : > { %3127 = vmatmul.mubr.bf16.vlgmr.msra.gmra.mxu1 %v3326_v36  ;;  %3135 = vmatpush3.bf16.msra.mxu0 %v3325_v22  ;;  %v2015_v34 = vshll.u32 %v2764_v21, 16  ;;  %v2029_v36 = vshll.u32 %v2766_v26, 16  ;;  %s3344_s20 = scalar_lea.vmem %s3343_s22, 1024  ;;  %p3345_p1 = scmp.lt.s32.totalorder %s3980_s16, %s3343_s22 }
  0x9b   : > { %3166 = vmatpush3.bf16.msra.mxu1 %v3325_v22  ;;  %3136 = vmatprep.subr.bf16.mxu0 %v3327_v41  ;;  %v2008_v22 = vrot.slane %v2006_v11, 4  ;;  %v2026_v35 = vor.u32 %v2025_v25, %v2022_v24  ;;  %p3346_p2 = scmp.lt.s32.totalorder %s3344_s20, %s3338_s10 }
  0x9c   : > { %3159 = vmatprep.subr.bf16.mxu1 %v3327_v41  ;;  %3106 = vmatprep.mubr.bf16.mxu0 %v3328_v46  ;;  %v2017_v43 = vrot.slane %v2015_v34, 5  ;;  %v2031_v45 = vrot.slane %v2029_v36, 5  ;;  %v3337_v46 = vld [vmem:[%s4109_s4 + $0x200] sm:$0xff]  }
  0x9d   : > { %3130 = vmatprep.mubr.bf16.mxu1 %v3331_v50  ;;  %v2012_v33 = vor.u32 %v2011_v23, %v2008_v22  ;;  %v2027_v44 = vrot.slane %v2026_v35, 4  ;;  %p3347_p3 = por %p3346_p2, %p3345_p1 }
  0x9e   : > { %3137 = vmatpush3.bf16.msra.mxu0 %v3327_v41 }
  0x9f   : > { %3167 = vmatpush3.bf16.msra.mxu1 %v3327_v41  ;;  %3138 = vmatprep.subr.bf16.mxu0 %v3330_v58  ;;  %v2085_v41 = vshll.u32 %v2774_v32, 16  ;;  %v2013_v42 = vrot.slane %v2012_v33, 4  ;;  %v2032_v52 = vsel %vm3697_vm2, %v2027_v44, %v2031_v45  ;;  %p3348_p5 = pnand %p3347_p3, %p3341_p0 }
  0xa0   : > { %3160 = vmatprep.subr.bf16.mxu1 %v3330_v58 }
  0xa1   : > { %3107 = vmatmul.mubr.bf16.gmra.mxu0 %v3329_v62  ;;  %v2087_v50 = vrot.slane %v2085_v41, 5  ;;  %v2018_v51 = vsel %vm3697_vm2, %v2013_v42, %v2017_v43 }
  0xa2   : > { %3139 = vmatpush3.bf16.msra.mxu0 %v3330_v58  ;;  %3131 = vmatmul.mubr.bf16.gmra.mxu1 %v3332_v1  ;;  %v2792_v55 = vcombine.low %v2018_v51, %v2032_v52 }
  0xa3   : > { %3168 = vmatpush3.bf16.msra.mxu1 %v3330_v58  ;;  %3140 = vmatprep.subr.bf16.mxu0 %v3333_v4  ;;  %v2088_v54 = vsel %vm3697_vm2, %v2083_v49, %v2087_v50 }
  0xa4   : > { %3161 = vmatprep.subr.bf16.mxu1 %v3333_v4  ;;  %3150 = vmatprep.mubr.bf16.mxu0 %v2791_v7  ;;  %v2794_v56 = vcombine.low %v2074_v53, %v2088_v54 }
  0xa5   : > { %3154 = vmatprep.mubr.bf16.mxu1 %v2793_v10 }
  0xa6   : > { %3141 = vmatpush3.bf16.msra.mxu0 %v3333_v4 }
  0xa7   : > { %3169 = vmatpush3.bf16.msra.mxu1 %v3333_v4  ;;  %3142 = vmatprep.subr.bf16.mxu0 %v3334_v15 }
  0xa8   : > { %3162 = vmatprep.subr.bf16.mxu1 %v3334_v15 }
  0xaa   : > { %3143 = vmatpush3.bf16.msra.mxu0 %v3334_v15 }
  0xab   : > { %3170 = vmatpush3.bf16.msra.mxu1 %v3334_v15  ;;  %3144 = vmatprep.subr.bf16.mxu0 %v3335_v20 }
  0xac   : > { %3163 = vmatprep.subr.bf16.mxu1 %v3335_v20 }
  0xae   : > { %3145 = vmatpush3.bf16.msra.mxu0 %v3335_v20 }
  0xaf   : > { %3171 = vmatpush3.bf16.msra.mxu1 %v3335_v20  ;;  %3146 = vmatprep.subr.bf16.mxu0 %v3336_v37 }
  0xb0   : > { %3164 = vmatprep.subr.bf16.mxu1 %v3336_v37 }
  0xb2   : > { %3147 = vmatpush3.bf16.msra.mxu0 %v3336_v37 }
  0xb3   : > { %3172 = vmatpush3.bf16.msra.mxu1 %v3336_v37  ;;  %3148 = vmatprep.subr.bf16.mxu0 %v3337_v46 }
  0xb4   : > { %3165 = vmatprep.subr.bf16.mxu1 %v3337_v46 }
  0xb6   : > { %3149 = vmatpush3.bf16.msra.mxu0 %v3337_v46 }
  0xb7   : > { %3173 = vmatpush3.bf16.msra.mxu1 %v3337_v46 }
  0xb9   : > { %3151 = vmatmul.mubr.bf16.vlgmr.msra.gmra.mxu0 %v2792_v55 }
  0xba   : > { %3155 = vmatmul.mubr.bf16.vlgmr.msra.gmra.mxu1 %v2794_v56 }
  0xf9   : > { %v2960_v57 = vpop.f32.mrf.mxu0 }
  0xfa   : > { %v2984_v58 = vpop.f32.mrf.mxu1 }
  0xfb   : > { %v544_v59 = vpop.f32.mrf.mxu0  ;;  %v690_v49 = vadd.f32 %v2984_v58, %v2960_v57 }
  0xfc   : > { %v681_v60 = vpop.f32.mrf.mxu1 }
  0xfd   : > { %v2961_v62 = vpop.f32.mrf.mxu0  ;;  %v682_v50 = vadd.f32 %v681_v60, %v544_v59 }
  0xfe   : > { %v2985_v63 = vpop.f32.mrf.mxu1 }
  0xff   : > { %v547_v0 = vpop.f32.mrf.mxu0  ;;  %v693_v51 = vadd.f32 %v2985_v63, %v2961_v62 }
 0x100   : > { %v684_v1 = vpop.f32.mrf.mxu1 }
 0x101   : > { %v2964_v2 = vpop.f32.mrf.mxu0  ;;  %v685_v55 = vadd.f32 %v684_v1, %v547_v0 }
 0x102   : > { %v2988_v3 = vpop.f32.mrf.mxu1 }
 0x103   : > { %v560_v4 = vpop.f32.mrf.mxu0  ;;  %v706_v52 = vadd.f32 %v2988_v3, %v2964_v2 }
 0x104   : > { %v697_v61 = vpop.f32.mrf.mxu1 }
 0x105   : > { %v2965_v5 = vpop.f32.mrf.mxu0 }
 0x106   : > { %v2989_v6 = vpop.f32.mrf.mxu1 }
 0x107   : > { %v563_v7 = vpop.f32.mrf.mxu0  ;;  %v709_v53 = vadd.f32 %v2989_v6, %v2965_v5 }
 0x108   : > { %v700_v8 = vpop.f32.mrf.mxu1 }
 0x119   : > { %v3008_v9 = vpop.f32.mrf.mxu0 }
 0x11a   : > { %v3032_v10 = vpop.f32.mrf.mxu1  ;;  %v991_v56 = vadd.f32 %v3008_v9, %v690_v49 }
 0x11b   : > { %v958_v11 = vpop.f32.mrf.mxu0 }
 0x11c   : > { %v1128_v12 = vpop.f32.mrf.mxu1  ;;  %v1161_v2 = vadd.f32 %v3032_v10, %v991_v56 }
 0x11d   : > { %v3009_v13 = vpop.f32.mrf.mxu0 }
 0x11e   : > { %v3033_v14 = vpop.f32.mrf.mxu1 }
 0x11f   : > { %v961_v15 = vpop.f32.mrf.mxu0 }
 0x120   : > { %v1131_v16 = vpop.f32.mrf.mxu1  ;;  %v990_v59 = vadd.f32 %v961_v15, %v685_v55 }
 0x121   : > { %v3012_v17 = vpop.f32.mrf.mxu0 }
 0x122   : > { %v3036_v18 = vpop.f32.mrf.mxu1  ;;  %v995_v57 = vadd.f32 %v3012_v17, %v706_v52  ;;  %v1160_v9 = vadd.f32 %v1131_v16, %v990_v59 }
 0x123   : > { %v974_v19 = vpop.f32.mrf.mxu0 }
 0x124   : > { %v1144_v20 = vpop.f32.mrf.mxu1  ;;  %v1165_v0 = vadd.f32 %v3036_v18, %v995_v57 }
 0x125   : > { %v3013_v21 = vpop.f32.mrf.mxu0 }
 0x126   : > { %v3037_v22 = vpop.f32.mrf.mxu1  ;;  %v996_v58 = vadd.f32 %v3013_v21, %v709_v53 }
 0x127   : > { %v977_v23 = vpop.f32.mrf.mxu0 }
 0x128   : > { %v1147_v24 = vpop.f32.mrf.mxu1  ;;  %v1166_v1 = vadd.f32 %v3037_v22, %v996_v58 }
 0x139   : > { %v3056_v25 = vpop.f32.mrf.mxu0 }
 0x13a   : > { %v3080_v26 = vpop.f32.mrf.mxu1  ;;  %v1331_v49 = vadd.f32 %v3056_v25, %v1161_v2 }
 0x13b   : > { %v1298_v27 = vpop.f32.mrf.mxu0 }
 0x13c   : > { %v1580_v28 = vpop.f32.mrf.mxu1  ;;  %v1613_v10 = vadd.f32 %v3080_v26, %v1331_v49 }
 0x13d   : > { %v3057_v29 = vpop.f32.mrf.mxu0 }
 0x13e   : > { %v3081_v30 = vpop.f32.mrf.mxu1 }
 0x13f   : > { %v1301_v31 = vpop.f32.mrf.mxu0 }
 0x140   : > { %v1583_v32 = vpop.f32.mrf.mxu1 }
 0x141   : > { %v3060_v33 = vpop.f32.mrf.mxu0 }
 0x142   : > { %v3084_v34 = vpop.f32.mrf.mxu1 }
 0x143   : > { %v1314_v35 = vpop.f32.mrf.mxu0 }
 0x144   : > { %v3949_v36 = vpop.f32.mrf.mxu1 }
 0x145   : > { %4122 = vst [vmem:[#allocation9_spill] sm:$0xff] %v3949_v36  ;;  %v3061_v37 = vpop.f32.mrf.mxu0  ;;  %v989_v36 = vadd.f32 %v958_v11, %v682_v50 }
 0x146   : > { %v3085_v38 = vpop.f32.mrf.mxu1 }
 0x147   : > { %v1317_v39 = vpop.f32.mrf.mxu0  ;;  %v1159_v3 = vadd.f32 %v1128_v12, %v989_v36 }
 0x148   : > { %v1599_v40 = vpop.f32.mrf.mxu1 }
 0x149   : > { %v1329_v11 = vadd.f32 %v1298_v27, %v1159_v3 }
 0x14b   : > { %v1611_v12 = vadd.f32 %v1580_v28, %v1329_v11 }
 0x159   : > { %v3104_v41 = vpop.f32.mrf.mxu0 }
 0x15a   : > { %v3951_v42 = vpop.f32.mrf.mxu1 }
 0x15b   : > { %4123 = vst [vmem:[#allocation10_spill] sm:$0xff] %v3951_v42  ;;  %v1751_v43 = vpop.f32.mrf.mxu0  ;;  %v992_v42 = vadd.f32 %v3009_v13, %v693_v51 }
 0x15c   : > { %v3953_v44 = vpop.f32.mrf.mxu1  ;;  %v1782_v25 = vadd.f32 %v1751_v43, %v1611_v12 }
 0x15d   : > { %4124 = vst [vmem:[#allocation11_spill] sm:$0xff] %v3953_v44  ;;  %v3105_v45 = vpop.f32.mrf.mxu0  ;;  %v1162_v5 = vadd.f32 %v3033_v14, %v992_v42 }
 0x15e   : > { %v3955_v46 = vpop.f32.mrf.mxu1 }
 0x15f   : > { %4125 = vst [vmem:[#allocation12_spill] sm:$0xff] %v3955_v46  ;;  %v1754_v47 = vpop.f32.mrf.mxu0  ;;  %v698_v46 = vadd.f32 %v697_v61, %v560_v4  ;;  %v1332_v50 = vadd.f32 %v3057_v29, %v1162_v5  ;;  %v1335_v4 = vadd.f32 %v3060_v33, %v1165_v0  ;;  %v1336_v61 = vadd.f32 %v3061_v37, %v1166_v1 }
 0x160   : > { %v3957_v48 = vpop.f32.mrf.mxu1 }
 0x161   : > { %4126 = vst [vmem:[#allocation13_spill] sm:$0xff] %v3957_v48  ;;  %v3108_v54 = vpop.f32.mrf.mxu0  ;;  %v701_v48 = vadd.f32 %v700_v8, %v563_v7  ;;  %v993_v60 = vadd.f32 %v974_v19, %v698_v46  ;;  %v1330_v8 = vadd.f32 %v1301_v31, %v1160_v9  ;;  %v1614_v14 = vadd.f32 %v3081_v30, %v1332_v50 }
 0x162   : > { %v3132_v44 = vpop.f32.mrf.mxu1  ;;  %v1617_v21 = vadd.f32 %v3084_v34, %v1335_v4  ;;  %v1618_v18 = vadd.f32 %v3085_v38, %v1336_v61 }
 0x163   : > { %v994_v62 = vadd.f32 %v977_v23, %v701_v48  ;;  %v1767_v63 = vpop.f32.mrf.mxu0  ;;  %v1163_v13 = vadd.f32 %v1144_v20, %v993_v60  ;;  %v1612_v16 = vadd.f32 %v1583_v32, %v1330_v8  ;;  %v1784_v23 = vadd.f32 %v3104_v41, %v1613_v10  ;;  %v4128_v32 = vld [vmem:[#allocation10_spill] sm:$0xff] }
 0x164   : > { %v1938_v6 = vpop.f32.mrf.mxu1  ;;  %v1785_v27 = vadd.f32 %v3105_v45, %v1614_v14  ;;  %v1788_v33 = vadd.f32 %v3108_v54, %v1617_v21 }
 0x165   : > { %v1164_v51 = vadd.f32 %v1147_v24, %v994_v62  ;;  %v3109_v7 = vpop.f32.mrf.mxu0  ;;  %v1333_v17 = vadd.f32 %v1314_v35, %v1163_v13  ;;  %v4127_v24 = vld [vmem:[#allocation9_spill] sm:$0xff]  ;;  %v1783_v26 = vadd.f32 %v1754_v47, %v1612_v16  ;;  %v1955_v38 = vadd.f32 %v4128_v32, %v1784_v23 }
 0x166   : > { %v3133_v15 = vpop.f32.mrf.mxu1  ;;  %v1789_v35 = vadd.f32 %v3109_v7, %v1618_v18  ;;  %v4130_v42 = vld [vmem:[#allocation12_spill] sm:$0xff]  ;;  %v1959_v46 = vadd.f32 %v3132_v44, %v1788_v33 }
 0x167   : > { %v1334_v19 = vadd.f32 %v1317_v39, %v1164_v51  ;;  %v1770_v22 = vpop.f32.mrf.mxu0  ;;  %v1615_v29 = vadd.f32 %v4127_v24, %v1333_v17  ;;  %v4129_v39 = vld [vmem:[#allocation11_spill] sm:$0xff]  ;;  %v1956_v43 = vadd.f32 %v4130_v42, %v1785_v27 }
 0x168   : > { %v1941_v20 = vpop.f32.mrf.mxu1  ;;  %v1953_v41 = vadd.f32 %v4129_v39, %v1782_v25  ;;  %v1960_v48 = vadd.f32 %v3133_v15, %v1789_v35  ;;  %v4131_v52 = vld [vmem:[#allocation13_spill] sm:$0xff] }
 0x169   : > { %v1616_v31 = vadd.f32 %v1599_v40, %v1334_v19  ;;  %v1786_v30 = vadd.f32 %v1767_v63, %v1615_v29  ;;  %v1954_v53 = vadd.f32 %v4131_v52, %v1783_v26 }
 0x16b   : > { %v1787_v34 = vadd.f32 %v1770_v22, %v1616_v31  ;;  %v1957_v57 = vadd.f32 %v1938_v6, %v1786_v30 }
 0x16d   : > { %v1958_v58 = vadd.f32 %v1941_v20, %v1787_v34 }
 0x179   : > { %v3152_v36 = vpop.f32.mrf.mxu0 }
 0x17a   : > { %v3156_v28 = vpop.f32.mrf.mxu1  ;;  %v2237_v54 = vadd.f32 %v3152_v36, %v1955_v38 }
 0x17b   : > { %v2204_v37 = vpop.f32.mrf.mxu0  ;;  %v3968_v59 = vadd.f32 %v3156_v28, %v1959_v46 }
 0x17c   : > { %v2220_v45 = vpop.f32.mrf.mxu1  ;;  %v2235_v47 = vadd.f32 %v2204_v37, %v1953_v41  ;;  %v2259_v50 = vmul.f32 %v2237_v54, %v2237_v54 }
 0x17d   : > { %v3153_v40 = vpop.f32.mrf.mxu0  ;;  %v2239_v3 = vadd.f32 %v2220_v45, %v1957_v57 }
 0x17e   : > { %v2238_v55 = vadd.f32 %v3153_v40, %v1956_v43  ;;  %v3157_v56 = vpop.f32.mrf.mxu1  ;;  %v2257_v1 = vmul.f32 %v2235_v47, %v2235_v47 }
 0x17f   : > { %v3970_v60 = vadd.f32 %v3157_v56, %v1960_v48  ;;  %v2207_v62 = vpop.f32.mrf.mxu0 }
 0x180   : > { %v2819_v63 = vpack.c.bf16 %v2238_v55, %v2237_v54  ;;  %v2236_v44 = vadd.f32 %v2207_v62, %v1954_v53  ;;  %v2223_v2 = vpop.f32.mrf.mxu1  ;;  %v2260_v4 = vmul.f32 %v2238_v55, %v2238_v55 }
 0x181   : > { %v2829_v5 = vpack.c.bf16 %v3970_v60, %v3968_v59  ;;  %v2240_v0 = vadd.f32 %v2223_v2, %v1958_v58 }
 0x182   : > { %2831 = vst [vmem:[%s351_s21 + $0x8] sm:$0xff] %v2819_v63   ;;  %v2243_v6 = vadd.f32 %v2236_v44, %v2235_v47  ;;  %v2258_v9 = vmul.f32 %v2236_v44, %v2236_v44  ;;  %v2814_v49 = vpack.c.bf16 %v2236_v44, %v2235_v47 }
 0x183   : > { %2833 = vst [vmem:[%s351_s21 + $0x18] sm:$0xff] %v2829_v5   ;;  %v2824_v11 = vpack.c.bf16 %v2240_v0, %v2239_v3 }
 0x184   : > { %v2244_v13 = vadd.f32 %v2243_v6, %v2237_v54  ;;  %v2265_v51 = vadd.f32 %v2258_v9, %v2257_v1  ;;  %2815 = vst [vmem:[%s351_s21] sm:$0xff] %v2814_v49  }
 0x185   : > { %2832 = vst [vmem:[%s351_s21 + $0x10] sm:$0xff] %v2824_v11  }
 0x186   : > { %v2266_v61 = vadd.f32 %v2265_v51, %v2259_v50  ;;  %v2245_v7 = vadd.f32 %v2244_v13, %v2238_v55 }
 0x187   : > { %3351 = shalt.err (!%p3348_p5)
}
 0x188   : > { %s3352_s15 = scalar_lea.hbm %s3978_s17, 512  ;;  %s3356_s18 = scalar_lea.hbm %s4110_s5, 1024 }
 0x189   : > { %p3353_p6 = scmp.ne.s32.totalorder %s3978_s17, %s3352_s15  ;;  %p3357_p10 = scmp.lt.s32.totalorder %s3978_s17, %s4110_s5 }
 0x18a   : > { %p3358_p11 = scmp.lt.s32.totalorder %s3356_s18, %s3352_s15 }
 0x18b   : > { %p3354_p7 = pnand %p3353_p6, %p3559_p4 }
 0x18c   : > { %p3359_p12 = por %p3358_p11, %p3357_p10 }
 0x18d   : > { %p3355_p9 = pneg %p3354_p7 }
 0x18f   : > { %p3360_p13 = pnand %p3359_p12, %p3355_p9 }
 0x191   : > { %3363 = shalt.err (!%p3360_p13)
}
 0x192   : > { %s3473_s10 = smov 64   ;;  %s3474_s22 = smov 4   ;;  %v2261_v8 = vmul.f32 %v2239_v3, %v2239_v3  ;;  %v2246_v15 = vadd.f32 %v2245_v7, %v2239_v3  ;;  %v2267_v17 = vadd.f32 %v2266_v61, %v2260_v4  ;;  %v2262_v10 = vmul.f32 %v2240_v0, %v2240_v0 }
 0x193   : > { %3175 = dma.vmem_to_hbm [thread:$0]  (%p3559_p4), %s3980_s16, 512, %s3978_s17, %s2296_s23, %s3473_s10, %s3473_s10, %s3474_s22   ;;  %v2263_v14 = vmul.f32 %v3968_v59, %v3968_v59  ;;  %v2264_v22 = vmul.f32 %v3970_v60, %v3970_v60 }
 0x194   : > { %v2247_v19 = vadd.f32 %v2246_v15, %v2240_v0  ;;  %v2268_v12 = vadd.f32 %v2267_v17, %v2261_v8  ;;  %s4132_s16 = sadd.s32 4294967295, %s3470_s29   ;;  %s2806_s23 = sshll.u32 %s3462_s27, 4 }
 0x195   : > { %s4013_s17 = sand.u32 1, %s4132_s16   ;;  %s357_s20 = scalar_lea.vmem [#allocation4], %s3960_s12 }
 0x196   : > { %v2248_v21 = vadd.f32 %v2247_v19, %v3968_v59  ;;  %v2269_v18 = vadd.f32 %v2268_v12, %v2262_v10  ;;  %s2335_s15 = sshll.u32 %s357_s20, 4  ;;  %s4115_s21 = scalar_lea.vmem [#allocation6], %s3960_s12  ;;  %s4025_s15 = int_to_ptr.vmem [resolvable:$true] %s2335_s15 }
 0x197   : > { %s2349_s30 = sshll.u32 %s4115_s21, 4  ;;  %s4023_s8 = scalar_lea.hbm %s4111_s6, %s2806_s23  ;;  %s4032_s30 = int_to_ptr.vmem [resolvable:$true] %s2349_s30 }
 0x198   : > { %v2249_v16 = vadd.f32 %v2248_v21, %v3970_v60  ;;  %v2270_v23 = vadd.f32 %v2269_v18, %v2263_v14  ;;  %s4030_s22 = scalar_lea.hbm %s4112_s7, %s2806_s23  ;;  %s3364_s21 = scalar_lea.vmem %s4025_s15, 16 }
 0x199   : > { %p3365_p0 = scmp.ne.s32.totalorder %s4025_s15, %s3364_s21  ;;  %s3475_s18 = smov [#allocation4]  }
 0x19a   : > { %v2250_v25 = vrot.slane %v2249_v16, 4  ;;  %v2271_v27 = vadd.f32 %v2270_v23, %v2264_v22  ;;  %s3368_s19 = sshll.u32 %s3475_s18, 4  ;;  %s3369_s19 = int_to_ptr.vmem [resolvable:$false] %s3368_s19 }
 0x19b   : > { %p3366_p1 = pnand %p3365_p0, %p3559_p4  ;;  %s3370_s0 = scalar_lea.vmem %s3369_s19, 32 }
 0x19c   : > { %v2272_v20 = vrot.slane %v2271_v27, 4  ;;  %v2251_v24 = vadd.f32 %v2250_v25, %v2249_v16  ;;  %p3371_p3 = scmp.lt.s32.totalorder %s4025_s15, %s3369_s19  ;;  %p3372_p5 = scmp.lt.s32.totalorder %s3370_s0, %s3364_s21 }
 0x19d   : > { %p3367_p2 = pneg %p3366_p1 }
 0x19e   : > { %v2252_v29 = vrot.slane %v2251_v24, 2  ;;  %v2273_v31 = vadd.f32 %v2272_v20, %v2271_v27  ;;  %p3373_p6 = por %p3372_p5, %p3371_p3 }
 0x1a0   : > { %v2253_v33 = vadd.f32 %v2252_v29, %v2251_v24  ;;  %v2274_v35 = vrot.slane %v2273_v31, 2  ;;  %p3374_p7 = pnand %p3373_p6, %p3367_p2 }
 0x1a2   : > { %v2254_v36 = vrot.slane %v2253_v33, 1  ;;  %v2275_v26 = vadd.f32 %v2274_v35, %v2273_v31 }
 0x1a4   : > { %v2255_v28 = vadd.f32 %v2254_v36, %v2253_v33  ;;  %v2276_v30 = vrot.slane %v2275_v26, 1 }
 0x1a6   : > { %2256 = vst [vmem:[%s357_s20] sm:$0x1] %v2255_v28  ;;  %v2277_v34 = vadd.f32 %v2276_v30, %v2275_v26 }
 0x1a7   : > { %3377 = shalt.err (!%p3374_p7)
}
 0x1a8   : > { %s3378_s23 = scalar_lea.hbm %s4023_s8, 16  ;;  %s3382_s10 = scalar_lea.hbm %s4111_s6, 32 }
 0x1a9   : > { %p3379_p9 = scmp.ne.s32.totalorder %s4023_s8, %s3378_s23  ;;  %p3383_p12 = scmp.lt.s32.totalorder %s4023_s8, %s4111_s6 }
 0x1aa   : > { %p3384_p13 = scmp.lt.s32.totalorder %s3382_s10, %s3378_s23 }
 0x1ab   : > { %p3380_p10 = pnand %p3379_p9, %p3559_p4 }
 0x1ac   : > { %p3385_p0 = por %p3384_p13, %p3383_p12 }
 0x1ad   : > { %p3381_p11 = pneg %p3380_p10 }
 0x1af   : > { %p3386_p1 = pnand %p3385_p0, %p3381_p11 }
 0x1b1   : > { %3389 = shalt.err (!%p3386_p1)
}
 0x1b2   : > { %s4133_s0 = scalar_lea.sflag [#allocation5], %s4013_s17  ;;  %s4134_s21 = scalar_lea.vmem [#allocation6], %s3960_s12 }
 0x1b3   : > { %3176 = dma.vmem_to_hbm [thread:$0]  (%p3559_p4), %s4025_s15, 16, %s4023_s8, %s4133_s0   ;;  %2278 = vst [vmem:[%s4134_s21] sm:$0x1] %v2277_v34 }
 0x1b4   : > { %s3390_s16 = scalar_lea.vmem %s4032_s30, 16  ;;  %s3476_s19 = smov [#allocation6]  }
 0x1b5   : > { %p3391_p2 = scmp.ne.s32.totalorder %s4032_s30, %s3390_s16  ;;  %s3394_s23 = sshll.u32 %s3476_s19, 4  ;;  %s3395_s23 = int_to_ptr.vmem [resolvable:$false] %s3394_s23 }
 0x1b6   : > { %s3396_s20 = scalar_lea.vmem %s3395_s23, 32  ;;  %p3397_p6 = scmp.lt.s32.totalorder %s4032_s30, %s3395_s23 }
 0x1b7   : > { %p3392_p3 = pnand %p3391_p2, %p3559_p4  ;;  %p3398_p7 = scmp.lt.s32.totalorder %s3396_s20, %s3390_s16 }
 0x1b9   : > { %p3393_p5 = pneg %p3392_p3  ;;  %p3399_p9 = por %p3398_p7, %p3397_p6 }
 0x1bb   : > { %p3400_p10 = pnand %p3399_p9, %p3393_p5 }
 0x1bd   : > { %3403 = shalt.err (!%p3400_p10)
}
 0x1be   : > { %s3404_s12 = scalar_lea.hbm %s4030_s22, 16  ;;  %s3408_s27 = scalar_lea.hbm %s4112_s7, 32 }
 0x1bf   : > { %p3405_p11 = scmp.ne.s32.totalorder %s4030_s22, %s3404_s12  ;;  %p3409_p0 = scmp.lt.s32.totalorder %s4030_s22, %s4112_s7 }
 0x1c0   : > { %p3410_p1 = scmp.lt.s32.totalorder %s3408_s27, %s3404_s12 }
 0x1c1   : > { %p3406_p12 = pnand %p3405_p11, %p3559_p4 }
 0x1c2   : > { %p3411_p2 = por %p3410_p1, %p3409_p0 }
 0x1c3   : > { %p3407_p13 = pneg %p3406_p12 }
 0x1c5   : > { %p3412_p3 = pnand %p3411_p2, %p3407_p13 }
 0x1c7   : > { %3415 = shalt.err (!%p3412_p3)
}
 0x1c8   : > { %3177 = dma.vmem_to_hbm [thread:$0]  (%p3559_p4), %s4032_s30, 16, %s4030_s22, %s4133_s0  }
 0x1c9 PF: > { %p3191_p5 = scmp.ge.s32.totalorder %s3470_s29, 2  ;;  %s2361_s21 = sand.u32 1, %s3450_s24  }
 0x1ca   : > { %s2362_s16 = scalar_lea.sflag [#allocation3], %s2361_s21 }
 0x1cb   : > { %p3182_p6 = pnand %p3191_p5, %p3568_p8 }
 0x1cd   : > { %p3183_p7 = pneg %p3182_p6 }
 0x1cf   : > { %3441 = dma.done.wait (%p3183_p7), %s2362_s16, 512  }
 0x1d0   : > { %3443 = vsyncadd (%p3183_p7), %s2362_s16, 4294966784  ;;  %s4135_s19 = sadd.s32 4294967294, %s3470_s29  }
 0x1d1   : > { %s2370_s11 = sand.u32 1, %s4135_s19  }
 0x1d2   : > { %s2371_s23 = scalar_lea.sflag [#allocation5], %s2370_s11 }
 0x1d3   : > { %3445 = dma.done.wait (%p3183_p7), %s2371_s23, 32  }
 0x1d4   : > { %3447 = vsyncadd (%p3183_p7), %s2371_s23, 4294967264  ;;  %s24_s29 = sadd.s32 1, %s3470_s29   ;;  %s4136_s24 = smov %s3454_s25 }
 0x1d5   : > { %p21_p4 = scmp.ge.s32.totalorder %s24_s29, 4   ;;  %s4137_s25 = smov %s3458_s26 }
 0x1d6   : > { %s4138_s26 = smov %s3574_s14  ;;  %s4139_s27 = smov %s3466_s28 }
 0x1d7   : > { %s4140_s28 = smov %s4142_s9  ;;  %23 = sbr.rel (!%p21_p4) target bundleno = 8 (0x8), region = 129 }
 0x1dc   :  { %2383 = vsyncpa [#allocation3], 1 }
 0x1dd   :  { %2385 = vsyncpa [#allocation3 + $0x1], 1 }
 0x1de   :  { %2386 = vsyncpa [#allocation5], 1 }
 0x1df   :  { %2388 = vsyncpa [#allocation5 + $0x1], 1 }

</bundles_post_ra>
